<compile_context>
chip_gen: v6e
topology: v6e:2x2x1
jax: 0.10.0
libtpu: 0.0.40
codegen_flags: <defaults>
</compile_context>

<pallas_src>
import functools

import jax
import jax.numpy as jnp
from jax import lax
from jax.experimental import pallas as pl
from jax.experimental.pallas import tpu as pltpu

C_PAD = 128  # lane-dense padded class dimension


# ----------------------------------------------------------------------------
# Fused Pallas kernel: all encoder layers + classifier head
# ----------------------------------------------------------------------------
def fused_transformer_kernel(
    x_ref,                       # (B, S, D)
    wqkv_ref, bqkv_ref,          # (L, D, 3D), (L, 1, 3D)   [Q columns pre-scaled]
    wo_ref, bo_ref,              # (L, D, D), (L, 1, D)
    ln1g_ref, ln1b_ref,          # (L, 1, D), (L, 1, D)
    w1_ref, b1_ref,              # (L, D, Hf), (L, 1, Hf)
    w2_ref, b2_ref,              # (L, Hf, D), (L, 1, D)
    ln2g_ref, ln2b_ref,          # (L, 1, D), (L, 1, D)
    wfc_ref, bfc_ref,            # (D, C_PAD), (1, C_PAD)
    o_ref,                       # (B, C_PAD)
    *, num_heads, num_layers, batch, seq,
):
    B, S, H = batch, seq, num_heads
    D = x_ref.shape[2]
    hd = D // H

    def layernorm(t, g, b):
        mu = jnp.mean(t, axis=-1, keepdims=True)
        var = jnp.mean(jnp.square(t - mu), axis=-1, keepdims=True)
        return (t - mu) * lax.rsqrt(var + 1e-5) * g + b

    # Current activations, batch-flattened: (B*S, D)
    h2 = x_ref[...].astype(jnp.float32).reshape(B * S, D)

    for l in range(num_layers):                       # static loop over layers
        # ---- fused QKV projection (pre-transposed, scale folded into Q) -----
        qkv = jnp.dot(h2, wqkv_ref[l], preferred_element_type=jnp.float32) + bqkv_ref[l]
        q3 = qkv[:, 0 * D:1 * D].reshape(B, S, D)
        k3 = qkv[:, 1 * D:2 * D].reshape(B, S, D)
        v3 = qkv[:, 2 * D:3 * D].reshape(B, S, D)

        # ---- batch all heads together: (H*B, S, hd) --------------------------
        qh = jnp.concatenate([q3[:, :, h * hd:(h + 1) * hd] for h in range(H)], axis=0)
        kh = jnp.concatenate([k3[:, :, h * hd:(h + 1) * hd] for h in range(H)], axis=0)
        vh = jnp.concatenate([v3[:, :, h * hd:(h + 1) * hd] for h in range(H)], axis=0)

        s = jnp.einsum("bqd,bkd->bqk", qh, kh, preferred_element_type=jnp.float32)
        s = s - jnp.max(s, axis=-1, keepdims=True)
        p = jnp.exp(s)
        p = p * pl.reciprocal(jnp.sum(p, axis=-1, keepdims=True), approx=True)
        oh = jnp.einsum("bqk,bkd->bqd", p, vh, preferred_element_type=jnp.float32)

        # back to (B, S, D) -> (B*S, D), then output projection
        attn = jnp.concatenate([oh[h * B:(h + 1) * B] for h in range(H)], axis=-1)
        attn = attn.reshape(B * S, D)
        attn = jnp.dot(attn, wo_ref[l], preferred_element_type=jnp.float32) + bo_ref[l]

        # ---- residual + layernorm 1 ------------------------------------------
        y = layernorm(h2 + attn, ln1g_ref[l], ln1b_ref[l])

        # Final layer: only the last time step feeds the classifier head, so the
        # FFN + LN2 epilogue is computed for that token only.
        if l == num_layers - 1:
            y = y.reshape(B, S, D)[:, S - 1, :]       # (B, D)

        # ---- feed-forward (Linear -> ReLU -> Linear) --------------------------
        h1 = jnp.maximum(
            jnp.dot(y, w1_ref[l], preferred_element_type=jnp.float32) + b1_ref[l], 0.0)
        ff = jnp.dot(h1, w2_ref[l], preferred_element_type=jnp.float32) + b2_ref[l]

        # ---- residual + layernorm 2 -------------------------------------------
        h2 = layernorm(y + ff, ln2g_ref[l], ln2b_ref[l])

    # ---- classifier head on the last time step (lane-dense padded output) ----
    logits = jnp.dot(h2, wfc_ref[...], preferred_element_type=jnp.float32) + bfc_ref[...]
    o_ref[...] = logits.astype(o_ref.dtype)


# ----------------------------------------------------------------------------
# Host-side weight packing (pre-transpose, fuse QKV, fold scale, pad head)
# ----------------------------------------------------------------------------
def pack_params(layer_params, w_fc, b_fc, num_heads, c_pad):
    D = layer_params[0]["wq"].shape[0]
    hd = D // num_heads
    scale = 1.0 / (float(hd) ** 0.5)

    wqkv_t = jnp.stack(
        [jnp.concatenate([p["wq"].T * scale, p["wk"].T, p["wv"].T], axis=1)
         for p in layer_params], axis=0)                                   # (L, D, 3D)
    bqkv = jnp.stack(
        [jnp.concatenate([p["bq"] * scale, p["bk"], p["bv"]], axis=1)
         for p in layer_params], axis=0)                                   # (L, 1, 3D)
    wo_t = jnp.stack([p["wo"].T for p in layer_params], axis=0)            # (L, D, D)
    bo = jnp.stack([p["bo"] for p in layer_params], axis=0)                # (L, 1, D)
    ln1_g = jnp.stack([p["ln1_g"] for p in layer_params], axis=0)
    ln1_b = jnp.stack([p["ln1_b"] for p in layer_params], axis=0)
    w1_t = jnp.stack([p["w1"].T for p in layer_params], axis=0)            # (L, D, Hf)
    b1 = jnp.stack([p["b1"] for p in layer_params], axis=0)                # (L, 1, Hf)
    w2_t = jnp.stack([p["w2"].T for p in layer_params], axis=0)            # (L, Hf, D)
    b2 = jnp.stack([p["b2"] for p in layer_params], axis=0)                # (L, 1, D)
    ln2_g = jnp.stack([p["ln2_g"] for p in layer_params], axis=0)
    ln2_b = jnp.stack([p["ln2_b"] for p in layer_params], axis=0)

    C = w_fc.shape[0]
    wfc_t = jnp.zeros((D, c_pad), jnp.float32).at[:, :C].set(w_fc.T)       # (D, C_PAD)
    bfc = jnp.zeros((1, c_pad), jnp.float32).at[:, :C].set(b_fc)           # (1, C_PAD)

    return (wqkv_t, bqkv, wo_t, bo, ln1_g, ln1_b,
            w1_t, b1, w2_t, b2, ln2_g, ln2_b, wfc_t, bfc)


# ----------------------------------------------------------------------------
# Wrapper: one pallas_call for the whole model
# ----------------------------------------------------------------------------
def transformer_classifier(x, layer_params, w_fc, b_fc, num_heads, c_pad=C_PAD):
    B, S, D = x.shape
    L = len(layer_params)
    C = w_fc.shape[0]
    packed = pack_params(layer_params, w_fc, b_fc, num_heads, c_pad)

    kernel = functools.partial(
        fused_transformer_kernel,
        num_heads=num_heads, num_layers=L, batch=B, seq=S)

    n_in = 1 + len(packed)
    logits_padded = pl.pallas_call(
        kernel,
        out_shape=jax.ShapeDtypeStruct((B, c_pad), jnp.float32),
        in_specs=[pl.BlockSpec(memory_space=pltpu.MemorySpace.VMEM) for _ in range(n_in)],
        out_specs=pl.BlockSpec(memory_space=pltpu.MemorySpace.VMEM),
    )(x, *packed)
    return logits_padded[:, :C]


# ----------------------------------------------------------------------------
# Pure-JAX reference (for a correctness check)
# ----------------------------------------------------------------------------
def ref_layer(x, p, num_heads):
    B, S, D = x.shape
    hd = D // num_heads
    q = x @ p["wq"].T + p["bq"]
    k = x @ p["wk"].T + p["bk"]
    v = x @ p["wv"].T + p["bv"]

    def split(t):  # (B,S,D) -> (B,H,S,hd)
        return t.reshape(B, S, num_heads, hd).transpose(0, 2, 1, 3)

    qh, kh, vh = split(q), split(k), split(v)
    s = jnp.einsum("bhqd,bhkd->bhqk", qh, kh) / jnp.sqrt(jnp.float32(hd))
    p_attn = jax.nn.softmax(s, axis=-1)
    o = jnp.einsum("bhqk,bhkd->bhqd", p_attn, vh).transpose(0, 2, 1, 3).reshape(B, S, D)
    attn = o @ p["wo"].T + p["bo"]

    def ln(t, g, b):
        mu = jnp.mean(t, axis=-1, keepdims=True)
        var = jnp.mean((t - mu) ** 2, axis=-1, keepdims=True)
        return (t - mu) * lax.rsqrt(var + 1e-5) * g + b

    y = ln(x + attn, p["ln1_g"], p["ln1_b"])
    ff = jnp.maximum(y @ p["w1"].T + p["b1"], 0.0) @ p["w2"].T + p["b2"]
    return ln(y + ff, p["ln2_g"], p["ln2_b"])


def ref_model(x, layer_params, w_fc, b_fc, num_heads):
    h = x
    for p in layer_params:
        h = ref_layer(h, p, num_heads)
    return h[:, -1, :] @ w_fc.T + b_fc


# ----------------------------------------------------------------------------
# Parameter construction + main
# ----------------------------------------------------------------------------
def make_params(key, num_layers, D, Hf, num_classes):
    params = []
    for _ in range(num_layers):
        keys = jax.random.split(key, 9)
        key = keys[0]
        p = {
            "wq": 0.05 * jax.random.normal(keys[1], (D, D), jnp.float32),
            "wk": 0.05 * jax.random.normal(keys[2], (D, D), jnp.float32),
            "wv": 0.05 * jax.random.normal(keys[3], (D, D), jnp.float32),
            "bq": 0.05 * jax.random.normal(keys[4], (1, D), jnp.float32),
            "bk": jnp.zeros((1, D), jnp.float32),
            "bv": jnp.zeros((1, D), jnp.float32),
            "wo": 0.05 * jax.random.normal(keys[5], (D, D), jnp.float32),
            "bo": jnp.zeros((1, D), jnp.float32),
            "ln1_g": jnp.ones((1, D), jnp.float32),
            "ln1_b": jnp.zeros((1, D), jnp.float32),
            "w1": 0.05 * jax.random.normal(keys[6], (Hf, D), jnp.float32),
            "b1": 0.05 * jax.random.normal(keys[7], (1, Hf), jnp.float32),
            "w2": 0.05 * jax.random.normal(keys[8], (D, Hf), jnp.float32),
            "b2": jnp.zeros((1, D), jnp.float32),
            "ln2_g": jnp.ones((1, D), jnp.float32),
            "ln2_b": jnp.zeros((1, D), jnp.float32),
        }
        params.append(p)
    kw, kb = jax.random.split(key)
    w_fc = 0.05 * jax.random.normal(kw, (num_classes, D), jnp.float32)
    b_fc = 0.05 * jax.random.normal(kb, (1, num_classes), jnp.float32)
    return params, w_fc, b_fc


if __name__ == "__main__":
    # Small, module-consistent shapes.
    B, S = 2, 8                 # batch, time_steps
    D = 32                      # input_dim (d_model)
    num_heads = 4               # head_dim = 8
    num_layers = 2
    Hf = 64                     # dim_feedforward
    num_classes = 10

    key = jax.random.PRNGKey(0)
    kx, kp = jax.random.split(key)
    x = jax.random.normal(kx, (B, S, D), jnp.float32)

    layer_params, w_fc, b_fc = make_params(kp, num_layers, D, Hf, num_classes)

    out = transformer_classifier(x, layer_params, w_fc, b_fc, num_heads)
    out = jax.block_until_ready(out)

    expected = ref_model(x, layer_params, w_fc, b_fc, num_heads)
    assert out.shape == (B, num_classes)
    # Slightly relaxed tolerance because the kernel uses the EUP approximate
    # reciprocal for the softmax normalization.
    assert jnp.allclose(out, expected, rtol=2e-3, atol=2e-3), "mismatch vs pure-JAX reference"

    print("KERNEL_OK")
</pallas_src>

<mosaic_0001>
module attributes {stable_mosaic.version = 11 : i64} {
  func.func @fused_transformer_kernel(%arg0: memref<2x8x32xf32, #tpu.memory_space<vmem>>, %arg1: memref<2x32x96xf32, #tpu.memory_space<vmem>>, %arg2: memref<2x1x96xf32, #tpu.memory_space<vmem>>, %arg3: memref<2x32x32xf32, #tpu.memory_space<vmem>>, %arg4: memref<2x1x32xf32, #tpu.memory_space<vmem>>, %arg5: memref<2x1x32xf32, #tpu.memory_space<vmem>>, %arg6: memref<2x1x32xf32, #tpu.memory_space<vmem>>, %arg7: memref<2x32x64xf32, #tpu.memory_space<vmem>>, %arg8: memref<2x1x64xf32, #tpu.memory_space<vmem>>, %arg9: memref<2x64x32xf32, #tpu.memory_space<vmem>>, %arg10: memref<2x1x32xf32, #tpu.memory_space<vmem>>, %arg11: memref<2x1x32xf32, #tpu.memory_space<vmem>>, %arg12: memref<2x1x32xf32, #tpu.memory_space<vmem>>, %arg13: memref<32x128xf32, #tpu.memory_space<vmem>>, %arg14: memref<1x128xf32, #tpu.memory_space<vmem>>, %arg15: memref<2x128xf32, #tpu.memory_space<vmem>>) attributes {dimension_semantics = [], scalar_prefetch = 0 : i64, scratch_operands = 0 : i64, tpu.core_type = #tpu.core_type<tc>} {
    %c0 = arith.constant 0 : index
    %c0_0 = arith.constant 0 : index
    %c0_1 = arith.constant 0 : index
    %0 = vector.load %arg0[%c0, %c0_0, %c0_1] : memref<2x8x32xf32, #tpu.memory_space<vmem>>, vector<2x8x32xf32>
    %1 = vector.shape_cast %0 : vector<2x8x32xf32> to vector<16x32xf32>
    %c0_2 = arith.constant 0 : index
    %c0_3 = arith.constant 0 : index
    %c0_4 = arith.constant 0 : index
    %2 = vector.load %arg1[%c0_2, %c0_3, %c0_4] : memref<2x32x96xf32, #tpu.memory_space<vmem>>, vector<1x32x96xf32>
    %3 = vector.shape_cast %2 : vector<1x32x96xf32> to vector<32x96xf32>
    %cst = arith.constant dense<0.000000e+00> : vector<16x96xf32>
    %4 = tpu.matmul %1, %3, %cst {dimension_numbers = #tpu.dot_dimension_numbers<[1], [0], [0], [1], [0, 0, 1, 1], [], []>} : vector<16x32xf32>, vector<32x96xf32>, vector<16x96xf32> -> vector<16x96xf32>
    %c0_5 = arith.constant 0 : index
    %c0_6 = arith.constant 0 : index
    %c0_7 = arith.constant 0 : index
    %5 = vector.load %arg2[%c0_5, %c0_6, %c0_7] : memref<2x1x96xf32, #tpu.memory_space<vmem>>, vector<1x1x96xf32>
    %6 = vector.shape_cast %5 : vector<1x1x96xf32> to vector<1x96xf32>
    %7 = vector.broadcast %6 : vector<1x96xf32> to vector<16x96xf32>
    %8 = arith.addf %4, %7 : vector<16x96xf32>
    %9 = vector.extract_strided_slice %8 {offsets = [0, 0], sizes = [16, 32], strides = [1, 1]} : vector<16x96xf32> to vector<16x32xf32>
    %10 = vector.shape_cast %9 : vector<16x32xf32> to vector<2x8x32xf32>
    %11 = vector.extract_strided_slice %8 {offsets = [0, 32], sizes = [16, 32], strides = [1, 1]} : vector<16x96xf32> to vector<16x32xf32>
    %12 = vector.shape_cast %11 : vector<16x32xf32> to vector<2x8x32xf32>
    %13 = vector.extract_strided_slice %8 {offsets = [0, 64], sizes = [16, 32], strides = [1, 1]} : vector<16x96xf32> to vector<16x32xf32>
    %14 = vector.shape_cast %13 : vector<16x32xf32> to vector<2x8x32xf32>
    %15 = vector.extract_strided_slice %10 {offsets = [0, 0, 0], sizes = [2, 8, 8], strides = [1, 1, 1]} : vector<2x8x32xf32> to vector<2x8x8xf32>
    %16 = vector.extract_strided_slice %10 {offsets = [0, 0, 8], sizes = [2, 8, 8], strides = [1, 1, 1]} : vector<2x8x32xf32> to vector<2x8x8xf32>
    %17 = vector.extract_strided_slice %10 {offsets = [0, 0, 16], sizes = [2, 8, 8], strides = [1, 1, 1]} : vector<2x8x32xf32> to vector<2x8x8xf32>
    %18 = vector.extract_strided_slice %10 {offsets = [0, 0, 24], sizes = [2, 8, 8], strides = [1, 1, 1]} : vector<2x8x32xf32> to vector<2x8x8xf32>
    %19 = tpu.concatenate %15, %16, %17, %18 in 0 : vector<2x8x8xf32>, vector<2x8x8xf32>, vector<2x8x8xf32>, vector<2x8x8xf32> -> vector<8x8x8xf32>
    %20 = vector.extract_strided_slice %12 {offsets = [0, 0, 0], sizes = [2, 8, 8], strides = [1, 1, 1]} : vector<2x8x32xf32> to vector<2x8x8xf32>
    %21 = vector.extract_strided_slice %12 {offsets = [0, 0, 8], sizes = [2, 8, 8], strides = [1, 1, 1]} : vector<2x8x32xf32> to vector<2x8x8xf32>
    %22 = vector.extract_strided_slice %12 {offsets = [0, 0, 16], sizes = [2, 8, 8], strides = [1, 1, 1]} : vector<2x8x32xf32> to vector<2x8x8xf32>
    %23 = vector.extract_strided_slice %12 {offsets = [0, 0, 24], sizes = [2, 8, 8], strides = [1, 1, 1]} : vector<2x8x32xf32> to vector<2x8x8xf32>
    %24 = tpu.concatenate %20, %21, %22, %23 in 0 : vector<2x8x8xf32>, vector<2x8x8xf32>, vector<2x8x8xf32>, vector<2x8x8xf32> -> vector<8x8x8xf32>
    %25 = vector.extract_strided_slice %14 {offsets = [0, 0, 0], sizes = [2, 8, 8], strides = [1, 1, 1]} : vector<2x8x32xf32> to vector<2x8x8xf32>
    %26 = vector.extract_strided_slice %14 {offsets = [0, 0, 8], sizes = [2, 8, 8], strides = [1, 1, 1]} : vector<2x8x32xf32> to vector<2x8x8xf32>
    %27 = vector.extract_strided_slice %14 {offsets = [0, 0, 16], sizes = [2, 8, 8], strides = [1, 1, 1]} : vector<2x8x32xf32> to vector<2x8x8xf32>
    %28 = vector.extract_strided_slice %14 {offsets = [0, 0, 24], sizes = [2, 8, 8], strides = [1, 1, 1]} : vector<2x8x32xf32> to vector<2x8x8xf32>
    %29 = tpu.concatenate %25, %26, %27, %28 in 0 : vector<2x8x8xf32>, vector<2x8x8xf32>, vector<2x8x8xf32>, vector<2x8x8xf32> -> vector<8x8x8xf32>
    "tpu.trace_start"() <{level = 10 : i32, message = "bqd,bkd->bqk"}> : () -> ()
    %cst_8 = arith.constant dense<0.000000e+00> : vector<8x8x8xf32>
    %30 = tpu.matmul %19, %24, %cst_8 {dimension_numbers = #tpu.dot_dimension_numbers<[2], [2], [1], [1], [0, 0, 0, 1, 1, 1], [0], [0]>} : vector<8x8x8xf32>, vector<8x8x8xf32>, vector<8x8x8xf32> -> vector<8x8x8xf32>
    "tpu.trace_stop"() : () -> ()
    %cst_9 = arith.constant dense<0xFF800000> : vector<8x8xf32>
    %31 = vector.multi_reduction <maximumf>, %30, %cst_9 [2] : vector<8x8x8xf32> to vector<8x8xf32>
    %32 = vector.shape_cast %31 : vector<8x8xf32> to vector<8x8x1xf32>
    %33 = vector.broadcast %32 : vector<8x8x1xf32> to vector<8x8x8xf32>
    %34 = arith.subf %30, %33 : vector<8x8x8xf32>
    %35 = math.exp %34 : vector<8x8x8xf32>
    %cst_10 = arith.constant dense<0.000000e+00> : vector<8x8xf32>
    %36 = vector.multi_reduction <add>, %35, %cst_10 [2] : vector<8x8x8xf32> to vector<8x8xf32>
    %37 = vector.shape_cast %36 : vector<8x8xf32> to vector<8x8x1xf32>
    %38 = tpu.reciprocal %37 {approx = true} : vector<8x8x1xf32> -> vector<8x8x1xf32>
    %39 = vector.broadcast %38 : vector<8x8x1xf32> to vector<8x8x8xf32>
    %40 = arith.mulf %35, %39 : vector<8x8x8xf32>
    "tpu.trace_start"() <{level = 10 : i32, message = "bqk,bkd->bqd"}> : () -> ()
    %cst_11 = arith.constant dense<0.000000e+00> : vector<8x8x8xf32>
    %41 = tpu.matmul %40, %29, %cst_11 {dimension_numbers = #tpu.dot_dimension_numbers<[2], [1], [1], [2], [0, 0, 0, 1, 1, 2], [0], [0]>} : vector<8x8x8xf32>, vector<8x8x8xf32>, vector<8x8x8xf32> -> vector<8x8x8xf32>
    "tpu.trace_stop"() : () -> ()
    %42 = vector.extract_strided_slice %41 {offsets = [0, 0, 0], sizes = [2, 8, 8], strides = [1, 1, 1]} : vector<8x8x8xf32> to vector<2x8x8xf32>
    %43 = vector.extract_strided_slice %41 {offsets = [2, 0, 0], sizes = [2, 8, 8], strides = [1, 1, 1]} : vector<8x8x8xf32> to vector<2x8x8xf32>
    %44 = vector.extract_strided_slice %41 {offsets = [4, 0, 0], sizes = [2, 8, 8], strides = [1, 1, 1]} : vector<8x8x8xf32> to vector<2x8x8xf32>
    %45 = vector.extract_strided_slice %41 {offsets = [6, 0, 0], sizes = [2, 8, 8], strides = [1, 1, 1]} : vector<8x8x8xf32> to vector<2x8x8xf32>
    %46 = tpu.concatenate %42, %43, %44, %45 in 2 : vector<2x8x8xf32>, vector<2x8x8xf32>, vector<2x8x8xf32>, vector<2x8x8xf32> -> vector<2x8x32xf32>
    %47 = vector.shape_cast %46 : vector<2x8x32xf32> to vector<16x32xf32>
    %c0_12 = arith.constant 0 : index
    %c0_13 = arith.constant 0 : index
    %c0_14 = arith.constant 0 : index
    %48 = vector.load %arg3[%c0_12, %c0_13, %c0_14] : memref<2x32x32xf32, #tpu.memory_space<vmem>>, vector<1x32x32xf32>
    %49 = vector.shape_cast %48 : vector<1x32x32xf32> to vector<32x32xf32>
    %cst_15 = arith.constant dense<0.000000e+00> : vector<16x32xf32>
    %50 = tpu.matmul %47, %49, %cst_15 {dimension_numbers = #tpu.dot_dimension_numbers<[1], [0], [0], [1], [0, 0, 1, 1], [], []>} : vector<16x32xf32>, vector<32x32xf32>, vector<16x32xf32> -> vector<16x32xf32>
    %c0_16 = arith.constant 0 : index
    %c0_17 = arith.constant 0 : index
    %c0_18 = arith.constant 0 : index
    %51 = vector.load %arg4[%c0_16, %c0_17, %c0_18] : memref<2x1x32xf32, #tpu.memory_space<vmem>>, vector<1x1x32xf32>
    %52 = vector.shape_cast %51 : vector<1x1x32xf32> to vector<1x32xf32>
    %53 = vector.broadcast %52 : vector<1x32xf32> to vector<16x32xf32>
    %54 = arith.addf %50, %53 : vector<16x32xf32>
    %55 = arith.addf %1, %54 : vector<16x32xf32>
    %c0_19 = arith.constant 0 : index
    %c0_20 = arith.constant 0 : index
    %c0_21 = arith.constant 0 : index
    %56 = vector.load %arg5[%c0_19, %c0_20, %c0_21] : memref<2x1x32xf32, #tpu.memory_space<vmem>>, vector<1x1x32xf32>
    %57 = vector.shape_cast %56 : vector<1x1x32xf32> to vector<1x32xf32>
    %c0_22 = arith.constant 0 : index
    %c0_23 = arith.constant 0 : index
    %c0_24 = arith.constant 0 : index
    %58 = vector.load %arg6[%c0_22, %c0_23, %c0_24] : memref<2x1x32xf32, #tpu.memory_space<vmem>>, vector<1x1x32xf32>
    %59 = vector.shape_cast %58 : vector<1x1x32xf32> to vector<1x32xf32>
    %cst_25 = arith.constant dense<0.000000e+00> : vector<16xf32>
    %60 = vector.multi_reduction <add>, %55, %cst_25 [1] : vector<16x32xf32> to vector<16xf32>
    %61 = vector.shape_cast %60 : vector<16xf32> to vector<16x1xf32>
    %cst_26 = arith.constant 3.200000e+01 : f32
    %62 = vector.broadcast %cst_26 : f32 to vector<16x1xf32>
    %63 = arith.divf %61, %62 : vector<16x1xf32>
    %64 = vector.broadcast %63 : vector<16x1xf32> to vector<16x32xf32>
    %65 = arith.subf %55, %64 : vector<16x32xf32>
    %66 = arith.mulf %65, %65 : vector<16x32xf32>
    %cst_27 = arith.constant dense<0.000000e+00> : vector<16xf32>
    %67 = vector.multi_reduction <add>, %66, %cst_27 [1] : vector<16x32xf32> to vector<16xf32>
    %68 = vector.shape_cast %67 : vector<16xf32> to vector<16x1xf32>
    %cst_28 = arith.constant 3.200000e+01 : f32
    %69 = vector.broadcast %cst_28 : f32 to vector<16x1xf32>
    %70 = arith.divf %68, %69 : vector<16x1xf32>
    %71 = vector.broadcast %63 : vector<16x1xf32> to vector<16x32xf32>
    %72 = arith.subf %55, %71 : vector<16x32xf32>
    %cst_29 = arith.constant 9.99999974E-6 : f32
    %73 = vector.broadcast %cst_29 : f32 to vector<16x1xf32>
    %74 = arith.addf %70, %73 : vector<16x1xf32>
    %75 = math.rsqrt %74 : vector<16x1xf32>
    %76 = vector.broadcast %75 : vector<16x1xf32> to vector<16x32xf32>
    %77 = arith.mulf %72, %76 : vector<16x32xf32>
    %78 = vector.broadcast %57 : vector<1x32xf32> to vector<16x32xf32>
    %79 = arith.mulf %77, %78 : vector<16x32xf32>
    %80 = vector.broadcast %59 : vector<1x32xf32> to vector<16x32xf32>
    %81 = arith.addf %79, %80 : vector<16x32xf32>
    %c0_30 = arith.constant 0 : index
    %c0_31 = arith.constant 0 : index
    %c0_32 = arith.constant 0 : index
    %82 = vector.load %arg7[%c0_30, %c0_31, %c0_32] : memref<2x32x64xf32, #tpu.memory_space<vmem>>, vector<1x32x64xf32>
    %83 = vector.shape_cast %82 : vector<1x32x64xf32> to vector<32x64xf32>
    %cst_33 = arith.constant dense<0.000000e+00> : vector<16x64xf32>
    %84 = tpu.matmul %81, %83, %cst_33 {dimension_numbers = #tpu.dot_dimension_numbers<[1], [0], [0], [1], [0, 0, 1, 1], [], []>} : vector<16x32xf32>, vector<32x64xf32>, vector<16x64xf32> -> vector<16x64xf32>
    %c0_34 = arith.constant 0 : index
    %c0_35 = arith.constant 0 : index
    %c0_36 = arith.constant 0 : index
    %85 = vector.load %arg8[%c0_34, %c0_35, %c0_36] : memref<2x1x64xf32, #tpu.memory_space<vmem>>, vector<1x1x64xf32>
    %86 = vector.shape_cast %85 : vector<1x1x64xf32> to vector<1x64xf32>
    %87 = vector.broadcast %86 : vector<1x64xf32> to vector<16x64xf32>
    %88 = arith.addf %84, %87 : vector<16x64xf32>
    %cst_37 = arith.constant 0.000000e+00 : f32
    %89 = vector.broadcast %cst_37 : f32 to vector<16x64xf32>
    %90 = arith.maximumf %88, %89 : vector<16x64xf32>
    %c0_38 = arith.constant 0 : index
    %c0_39 = arith.constant 0 : index
    %c0_40 = arith.constant 0 : index
    %91 = vector.load %arg9[%c0_38, %c0_39, %c0_40] : memref<2x64x32xf32, #tpu.memory_space<vmem>>, vector<1x64x32xf32>
    %92 = vector.shape_cast %91 : vector<1x64x32xf32> to vector<64x32xf32>
    %cst_41 = arith.constant dense<0.000000e+00> : vector<16x32xf32>
    %93 = tpu.matmul %90, %92, %cst_41 {dimension_numbers = #tpu.dot_dimension_numbers<[1], [0], [0], [1], [0, 0, 1, 1], [], []>} : vector<16x64xf32>, vector<64x32xf32>, vector<16x32xf32> -> vector<16x32xf32>
    %c0_42 = arith.constant 0 : index
    %c0_43 = arith.constant 0 : index
    %c0_44 = arith.constant 0 : index
    %94 = vector.load %arg10[%c0_42, %c0_43, %c0_44] : memref<2x1x32xf32, #tpu.memory_space<vmem>>, vector<1x1x32xf32>
    %95 = vector.shape_cast %94 : vector<1x1x32xf32> to vector<1x32xf32>
    %96 = vector.broadcast %95 : vector<1x32xf32> to vector<16x32xf32>
    %97 = arith.addf %93, %96 : vector<16x32xf32>
    %98 = arith.addf %81, %97 : vector<16x32xf32>
    %c0_45 = arith.constant 0 : index
    %c0_46 = arith.constant 0 : index
    %c0_47 = arith.constant 0 : index
    %99 = vector.load %arg11[%c0_45, %c0_46, %c0_47] : memref<2x1x32xf32, #tpu.memory_space<vmem>>, vector<1x1x32xf32>
    %100 = vector.shape_cast %99 : vector<1x1x32xf32> to vector<1x32xf32>
    %c0_48 = arith.constant 0 : index
    %c0_49 = arith.constant 0 : index
    %c0_50 = arith.constant 0 : index
    %101 = vector.load %arg12[%c0_48, %c0_49, %c0_50] : memref<2x1x32xf32, #tpu.memory_space<vmem>>, vector<1x1x32xf32>
    %102 = vector.shape_cast %101 : vector<1x1x32xf32> to vector<1x32xf32>
    %cst_51 = arith.constant dense<0.000000e+00> : vector<16xf32>
    %103 = vector.multi_reduction <add>, %98, %cst_51 [1] : vector<16x32xf32> to vector<16xf32>
    %104 = vector.shape_cast %103 : vector<16xf32> to vector<16x1xf32>
    %cst_52 = arith.constant 3.200000e+01 : f32
    %105 = vector.broadcast %cst_52 : f32 to vector<16x1xf32>
    %106 = arith.divf %104, %105 : vector<16x1xf32>
    %107 = vector.broadcast %106 : vector<16x1xf32> to vector<16x32xf32>
    %108 = arith.subf %98, %107 : vector<16x32xf32>
    %109 = arith.mulf %108, %108 : vector<16x32xf32>
    %cst_53 = arith.constant dense<0.000000e+00> : vector<16xf32>
    %110 = vector.multi_reduction <add>, %109, %cst_53 [1] : vector<16x32xf32> to vector<16xf32>
    %111 = vector.shape_cast %110 : vector<16xf32> to vector<16x1xf32>
    %cst_54 = arith.constant 3.200000e+01 : f32
    %112 = vector.broadcast %cst_54 : f32 to vector<16x1xf32>
    %113 = arith.divf %111, %112 : vector<16x1xf32>
    %114 = vector.broadcast %106 : vector<16x1xf32> to vector<16x32xf32>
    %115 = arith.subf %98, %114 : vector<16x32xf32>
    %cst_55 = arith.constant 9.99999974E-6 : f32
    %116 = vector.broadcast %cst_55 : f32 to vector<16x1xf32>
    %117 = arith.addf %113, %116 : vector<16x1xf32>
    %118 = math.rsqrt %117 : vector<16x1xf32>
    %119 = vector.broadcast %118 : vector<16x1xf32> to vector<16x32xf32>
    %120 = arith.mulf %115, %119 : vector<16x32xf32>
    %121 = vector.broadcast %100 : vector<1x32xf32> to vector<16x32xf32>
    %122 = arith.mulf %120, %121 : vector<16x32xf32>
    %123 = vector.broadcast %102 : vector<1x32xf32> to vector<16x32xf32>
    %124 = arith.addf %122, %123 : vector<16x32xf32>
    %c1 = arith.constant 1 : index
    %c0_56 = arith.constant 0 : index
    %c0_57 = arith.constant 0 : index
    %125 = vector.load %arg1[%c1, %c0_56, %c0_57] : memref<2x32x96xf32, #tpu.memory_space<vmem>>, vector<1x32x96xf32>
    %126 = vector.shape_cast %125 : vector<1x32x96xf32> to vector<32x96xf32>
    %cst_58 = arith.constant dense<0.000000e+00> : vector<16x96xf32>
    %127 = tpu.matmul %124, %126, %cst_58 {dimension_numbers = #tpu.dot_dimension_numbers<[1], [0], [0], [1], [0, 0, 1, 1], [], []>} : vector<16x32xf32>, vector<32x96xf32>, vector<16x96xf32> -> vector<16x96xf32>
    %c1_59 = arith.constant 1 : index
    %c0_60 = arith.constant 0 : index
    %c0_61 = arith.constant 0 : index
    %128 = vector.load %arg2[%c1_59, %c0_60, %c0_61] : memref<2x1x96xf32, #tpu.memory_space<vmem>>, vector<1x1x96xf32>
    %129 = vector.shape_cast %128 : vector<1x1x96xf32> to vector<1x96xf32>
    %130 = vector.broadcast %129 : vector<1x96xf32> to vector<16x96xf32>
    %131 = arith.addf %127, %130 : vector<16x96xf32>
    %132 = vector.extract_strided_slice %131 {offsets = [0, 0], sizes = [16, 32], strides = [1, 1]} : vector<16x96xf32> to vector<16x32xf32>
    %133 = vector.shape_cast %132 : vector<16x32xf32> to vector<2x8x32xf32>
    %134 = vector.extract_strided_slice %131 {offsets = [0, 32], sizes = [16, 32], strides = [1, 1]} : vector<16x96xf32> to vector<16x32xf32>
    %135 = vector.shape_cast %134 : vector<16x32xf32> to vector<2x8x32xf32>
    %136 = vector.extract_strided_slice %131 {offsets = [0, 64], sizes = [16, 32], strides = [1, 1]} : vector<16x96xf32> to vector<16x32xf32>
    %137 = vector.shape_cast %136 : vector<16x32xf32> to vector<2x8x32xf32>
    %138 = vector.extract_strided_slice %133 {offsets = [0, 0, 0], sizes = [2, 8, 8], strides = [1, 1, 1]} : vector<2x8x32xf32> to vector<2x8x8xf32>
    %139 = vector.extract_strided_slice %133 {offsets = [0, 0, 8], sizes = [2, 8, 8], strides = [1, 1, 1]} : vector<2x8x32xf32> to vector<2x8x8xf32>
    %140 = vector.extract_strided_slice %133 {offsets = [0, 0, 16], sizes = [2, 8, 8], strides = [1, 1, 1]} : vector<2x8x32xf32> to vector<2x8x8xf32>
    %141 = vector.extract_strided_slice %133 {offsets = [0, 0, 24], sizes = [2, 8, 8], strides = [1, 1, 1]} : vector<2x8x32xf32> to vector<2x8x8xf32>
    %142 = tpu.concatenate %138, %139, %140, %141 in 0 : vector<2x8x8xf32>, vector<2x8x8xf32>, vector<2x8x8xf32>, vector<2x8x8xf32> -> vector<8x8x8xf32>
    %143 = vector.extract_strided_slice %135 {offsets = [0, 0, 0], sizes = [2, 8, 8], strides = [1, 1, 1]} : vector<2x8x32xf32> to vector<2x8x8xf32>
    %144 = vector.extract_strided_slice %135 {offsets = [0, 0, 8], sizes = [2, 8, 8], strides = [1, 1, 1]} : vector<2x8x32xf32> to vector<2x8x8xf32>
    %145 = vector.extract_strided_slice %135 {offsets = [0, 0, 16], sizes = [2, 8, 8], strides = [1, 1, 1]} : vector<2x8x32xf32> to vector<2x8x8xf32>
    %146 = vector.extract_strided_slice %135 {offsets = [0, 0, 24], sizes = [2, 8, 8], strides = [1, 1, 1]} : vector<2x8x32xf32> to vector<2x8x8xf32>
    %147 = tpu.concatenate %143, %144, %145, %146 in 0 : vector<2x8x8xf32>, vector<2x8x8xf32>, vector<2x8x8xf32>, vector<2x8x8xf32> -> vector<8x8x8xf32>
    %148 = vector.extract_strided_slice %137 {offsets = [0, 0, 0], sizes = [2, 8, 8], strides = [1, 1, 1]} : vector<2x8x32xf32> to vector<2x8x8xf32>
    %149 = vector.extract_strided_slice %137 {offsets = [0, 0, 8], sizes = [2, 8, 8], strides = [1, 1, 1]} : vector<2x8x32xf32> to vector<2x8x8xf32>
    %150 = vector.extract_strided_slice %137 {offsets = [0, 0, 16], sizes = [2, 8, 8], strides = [1, 1, 1]} : vector<2x8x32xf32> to vector<2x8x8xf32>
    %151 = vector.extract_strided_slice %137 {offsets = [0, 0, 24], sizes = [2, 8, 8], strides = [1, 1, 1]} : vector<2x8x32xf32> to vector<2x8x8xf32>
    %152 = tpu.concatenate %148, %149, %150, %151 in 0 : vector<2x8x8xf32>, vector<2x8x8xf32>, vector<2x8x8xf32>, vector<2x8x8xf32> -> vector<8x8x8xf32>
    "tpu.trace_start"() <{level = 10 : i32, message = "bqd,bkd->bqk"}> : () -> ()
    %cst_62 = arith.constant dense<0.000000e+00> : vector<8x8x8xf32>
    %153 = tpu.matmul %142, %147, %cst_62 {dimension_numbers = #tpu.dot_dimension_numbers<[2], [2], [1], [1], [0, 0, 0, 1, 1, 1], [0], [0]>} : vector<8x8x8xf32>, vector<8x8x8xf32>, vector<8x8x8xf32> -> vector<8x8x8xf32>
    "tpu.trace_stop"() : () -> ()
    %cst_63 = arith.constant dense<0xFF800000> : vector<8x8xf32>
    %154 = vector.multi_reduction <maximumf>, %153, %cst_63 [2] : vector<8x8x8xf32> to vector<8x8xf32>
    %155 = vector.shape_cast %154 : vector<8x8xf32> to vector<8x8x1xf32>
    %156 = vector.broadcast %155 : vector<8x8x1xf32> to vector<8x8x8xf32>
    %157 = arith.subf %153, %156 : vector<8x8x8xf32>
    %158 = math.exp %157 : vector<8x8x8xf32>
    %cst_64 = arith.constant dense<0.000000e+00> : vector<8x8xf32>
    %159 = vector.multi_reduction <add>, %158, %cst_64 [2] : vector<8x8x8xf32> to vector<8x8xf32>
    %160 = vector.shape_cast %159 : vector<8x8xf32> to vector<8x8x1xf32>
    %161 = tpu.reciprocal %160 {approx = true} : vector<8x8x1xf32> -> vector<8x8x1xf32>
    %162 = vector.broadcast %161 : vector<8x8x1xf32> to vector<8x8x8xf32>
    %163 = arith.mulf %158, %162 : vector<8x8x8xf32>
    "tpu.trace_start"() <{level = 10 : i32, message = "bqk,bkd->bqd"}> : () -> ()
    %cst_65 = arith.constant dense<0.000000e+00> : vector<8x8x8xf32>
    %164 = tpu.matmul %163, %152, %cst_65 {dimension_numbers = #tpu.dot_dimension_numbers<[2], [1], [1], [2], [0, 0, 0, 1, 1, 2], [0], [0]>} : vector<8x8x8xf32>, vector<8x8x8xf32>, vector<8x8x8xf32> -> vector<8x8x8xf32>
    "tpu.trace_stop"() : () -> ()
    %165 = vector.extract_strided_slice %164 {offsets = [0, 0, 0], sizes = [2, 8, 8], strides = [1, 1, 1]} : vector<8x8x8xf32> to vector<2x8x8xf32>
    %166 = vector.extract_strided_slice %164 {offsets = [2, 0, 0], sizes = [2, 8, 8], strides = [1, 1, 1]} : vector<8x8x8xf32> to vector<2x8x8xf32>
    %167 = vector.extract_strided_slice %164 {offsets = [4, 0, 0], sizes = [2, 8, 8], strides = [1, 1, 1]} : vector<8x8x8xf32> to vector<2x8x8xf32>
    %168 = vector.extract_strided_slice %164 {offsets = [6, 0, 0], sizes = [2, 8, 8], strides = [1, 1, 1]} : vector<8x8x8xf32> to vector<2x8x8xf32>
    %169 = tpu.concatenate %165, %166, %167, %168 in 2 : vector<2x8x8xf32>, vector<2x8x8xf32>, vector<2x8x8xf32>, vector<2x8x8xf32> -> vector<2x8x32xf32>
    %170 = vector.shape_cast %169 : vector<2x8x32xf32> to vector<16x32xf32>
    %c1_66 = arith.constant 1 : index
    %c0_67 = arith.constant 0 : index
    %c0_68 = arith.constant 0 : index
    %171 = vector.load %arg3[%c1_66, %c0_67, %c0_68] : memref<2x32x32xf32, #tpu.memory_space<vmem>>, vector<1x32x32xf32>
    %172 = vector.shape_cast %171 : vector<1x32x32xf32> to vector<32x32xf32>
    %cst_69 = arith.constant dense<0.000000e+00> : vector<16x32xf32>
    %173 = tpu.matmul %170, %172, %cst_69 {dimension_numbers = #tpu.dot_dimension_numbers<[1], [0], [0], [1], [0, 0, 1, 1], [], []>} : vector<16x32xf32>, vector<32x32xf32>, vector<16x32xf32> -> vector<16x32xf32>
    %c1_70 = arith.constant 1 : index
    %c0_71 = arith.constant 0 : index
    %c0_72 = arith.constant 0 : index
    %174 = vector.load %arg4[%c1_70, %c0_71, %c0_72] : memref<2x1x32xf32, #tpu.memory_space<vmem>>, vector<1x1x32xf32>
    %175 = vector.shape_cast %174 : vector<1x1x32xf32> to vector<1x32xf32>
    %176 = vector.broadcast %175 : vector<1x32xf32> to vector<16x32xf32>
    %177 = arith.addf %173, %176 : vector<16x32xf32>
    %178 = arith.addf %124, %177 : vector<16x32xf32>
    %c1_73 = arith.constant 1 : index
    %c0_74 = arith.constant 0 : index
    %c0_75 = arith.constant 0 : index
    %179 = vector.load %arg5[%c1_73, %c0_74, %c0_75] : memref<2x1x32xf32, #tpu.memory_space<vmem>>, vector<1x1x32xf32>
    %180 = vector.shape_cast %179 : vector<1x1x32xf32> to vector<1x32xf32>
    %c1_76 = arith.constant 1 : index
    %c0_77 = arith.constant 0 : index
    %c0_78 = arith.constant 0 : index
    %181 = vector.load %arg6[%c1_76, %c0_77, %c0_78] : memref<2x1x32xf32, #tpu.memory_space<vmem>>, vector<1x1x32xf32>
    %182 = vector.shape_cast %181 : vector<1x1x32xf32> to vector<1x32xf32>
    %cst_79 = arith.constant dense<0.000000e+00> : vector<16xf32>
    %183 = vector.multi_reduction <add>, %178, %cst_79 [1] : vector<16x32xf32> to vector<16xf32>
    %184 = vector.shape_cast %183 : vector<16xf32> to vector<16x1xf32>
    %cst_80 = arith.constant 3.200000e+01 : f32
    %185 = vector.broadcast %cst_80 : f32 to vector<16x1xf32>
    %186 = arith.divf %184, %185 : vector<16x1xf32>
    %187 = vector.broadcast %186 : vector<16x1xf32> to vector<16x32xf32>
    %188 = arith.subf %178, %187 : vector<16x32xf32>
    %189 = arith.mulf %188, %188 : vector<16x32xf32>
    %cst_81 = arith.constant dense<0.000000e+00> : vector<16xf32>
    %190 = vector.multi_reduction <add>, %189, %cst_81 [1] : vector<16x32xf32> to vector<16xf32>
    %191 = vector.shape_cast %190 : vector<16xf32> to vector<16x1xf32>
    %cst_82 = arith.constant 3.200000e+01 : f32
    %192 = vector.broadcast %cst_82 : f32 to vector<16x1xf32>
    %193 = arith.divf %191, %192 : vector<16x1xf32>
    %194 = vector.broadcast %186 : vector<16x1xf32> to vector<16x32xf32>
    %195 = arith.subf %178, %194 : vector<16x32xf32>
    %cst_83 = arith.constant 9.99999974E-6 : f32
    %196 = vector.broadcast %cst_83 : f32 to vector<16x1xf32>
    %197 = arith.addf %193, %196 : vector<16x1xf32>
    %198 = math.rsqrt %197 : vector<16x1xf32>
    %199 = vector.broadcast %198 : vector<16x1xf32> to vector<16x32xf32>
    %200 = arith.mulf %195, %199 : vector<16x32xf32>
    %201 = vector.broadcast %180 : vector<1x32xf32> to vector<16x32xf32>
    %202 = arith.mulf %200, %201 : vector<16x32xf32>
    %203 = vector.broadcast %182 : vector<1x32xf32> to vector<16x32xf32>
    %204 = arith.addf %202, %203 : vector<16x32xf32>
    %205 = vector.shape_cast %204 : vector<16x32xf32> to vector<2x8x32xf32>
    %206 = vector.extract_strided_slice %205 {offsets = [0, 7, 0], sizes = [2, 1, 32], strides = [1, 1, 1]} : vector<2x8x32xf32> to vector<2x1x32xf32>
    %207 = vector.shape_cast %206 : vector<2x1x32xf32> to vector<2x32xf32>
    %c1_84 = arith.constant 1 : index
    %c0_85 = arith.constant 0 : index
    %c0_86 = arith.constant 0 : index
    %208 = vector.load %arg7[%c1_84, %c0_85, %c0_86] : memref<2x32x64xf32, #tpu.memory_space<vmem>>, vector<1x32x64xf32>
    %209 = vector.shape_cast %208 : vector<1x32x64xf32> to vector<32x64xf32>
    %cst_87 = arith.constant dense<0.000000e+00> : vector<2x64xf32>
    %210 = tpu.matmul %207, %209, %cst_87 {dimension_numbers = #tpu.dot_dimension_numbers<[1], [0], [0], [1], [0, 0, 1, 1], [], []>} : vector<2x32xf32>, vector<32x64xf32>, vector<2x64xf32> -> vector<2x64xf32>
    %c1_88 = arith.constant 1 : index
    %c0_89 = arith.constant 0 : index
    %c0_90 = arith.constant 0 : index
    %211 = vector.load %arg8[%c1_88, %c0_89, %c0_90] : memref<2x1x64xf32, #tpu.memory_space<vmem>>, vector<1x1x64xf32>
    %212 = vector.shape_cast %211 : vector<1x1x64xf32> to vector<1x64xf32>
    %213 = vector.broadcast %212 : vector<1x64xf32> to vector<2x64xf32>
    %214 = arith.addf %210, %213 : vector<2x64xf32>
    %cst_91 = arith.constant 0.000000e+00 : f32
    %215 = vector.broadcast %cst_91 : f32 to vector<2x64xf32>
    %216 = arith.maximumf %214, %215 : vector<2x64xf32>
    %c1_92 = arith.constant 1 : index
    %c0_93 = arith.constant 0 : index
    %c0_94 = arith.constant 0 : index
    %217 = vector.load %arg9[%c1_92, %c0_93, %c0_94] : memref<2x64x32xf32, #tpu.memory_space<vmem>>, vector<1x64x32xf32>
    %218 = vector.shape_cast %217 : vector<1x64x32xf32> to vector<64x32xf32>
    %cst_95 = arith.constant dense<0.000000e+00> : vector<2x32xf32>
    %219 = tpu.matmul %216, %218, %cst_95 {dimension_numbers = #tpu.dot_dimension_numbers<[1], [0], [0], [1], [0, 0, 1, 1], [], []>} : vector<2x64xf32>, vector<64x32xf32>, vector<2x32xf32> -> vector<2x32xf32>
    %c1_96 = arith.constant 1 : index
    %c0_97 = arith.constant 0 : index
    %c0_98 = arith.constant 0 : index
    %220 = vector.load %arg10[%c1_96, %c0_97, %c0_98] : memref<2x1x32xf32, #tpu.memory_space<vmem>>, vector<1x1x32xf32>
    %221 = vector.shape_cast %220 : vector<1x1x32xf32> to vector<1x32xf32>
    %222 = vector.broadcast %221 : vector<1x32xf32> to vector<2x32xf32>
    %223 = arith.addf %219, %222 : vector<2x32xf32>
    %224 = arith.addf %207, %223 : vector<2x32xf32>
    %c1_99 = arith.constant 1 : index
    %c0_100 = arith.constant 0 : index
    %c0_101 = arith.constant 0 : index
    %225 = vector.load %arg11[%c1_99, %c0_100, %c0_101] : memref<2x1x32xf32, #tpu.memory_space<vmem>>, vector<1x1x32xf32>
    %226 = vector.shape_cast %225 : vector<1x1x32xf32> to vector<1x32xf32>
    %c1_102 = arith.constant 1 : index
    %c0_103 = arith.constant 0 : index
    %c0_104 = arith.constant 0 : index
    %227 = vector.load %arg12[%c1_102, %c0_103, %c0_104] : memref<2x1x32xf32, #tpu.memory_space<vmem>>, vector<1x1x32xf32>
    %228 = vector.shape_cast %227 : vector<1x1x32xf32> to vector<1x32xf32>
    %cst_105 = arith.constant dense<0.000000e+00> : vector<2xf32>
    %229 = vector.multi_reduction <add>, %224, %cst_105 [1] : vector<2x32xf32> to vector<2xf32>
    %230 = vector.shape_cast %229 : vector<2xf32> to vector<2x1xf32>
    %cst_106 = arith.constant 3.200000e+01 : f32
    %231 = vector.broadcast %cst_106 : f32 to vector<2x1xf32>
    %232 = arith.divf %230, %231 : vector<2x1xf32>
    %233 = vector.broadcast %232 : vector<2x1xf32> to vector<2x32xf32>
    %234 = arith.subf %224, %233 : vector<2x32xf32>
    %235 = arith.mulf %234, %234 : vector<2x32xf32>
    %cst_107 = arith.constant dense<0.000000e+00> : vector<2xf32>
    %236 = vector.multi_reduction <add>, %235, %cst_107 [1] : vector<2x32xf32> to vector<2xf32>
    %237 = vector.shape_cast %236 : vector<2xf32> to vector<2x1xf32>
    %cst_108 = arith.constant 3.200000e+01 : f32
    %238 = vector.broadcast %cst_108 : f32 to vector<2x1xf32>
    %239 = arith.divf %237, %238 : vector<2x1xf32>
    %240 = vector.broadcast %232 : vector<2x1xf32> to vector<2x32xf32>
    %241 = arith.subf %224, %240 : vector<2x32xf32>
    %cst_109 = arith.constant 9.99999974E-6 : f32
    %242 = vector.broadcast %cst_109 : f32 to vector<2x1xf32>
    %243 = arith.addf %239, %242 : vector<2x1xf32>
    %244 = math.rsqrt %243 : vector<2x1xf32>
    %245 = vector.broadcast %244 : vector<2x1xf32> to vector<2x32xf32>
    %246 = arith.mulf %241, %245 : vector<2x32xf32>
    %247 = vector.broadcast %226 : vector<1x32xf32> to vector<2x32xf32>
    %248 = arith.mulf %246, %247 : vector<2x32xf32>
    %249 = vector.broadcast %228 : vector<1x32xf32> to vector<2x32xf32>
    %250 = arith.addf %248, %249 : vector<2x32xf32>
    %c0_110 = arith.constant 0 : index
    %c0_111 = arith.constant 0 : index
    %251 = vector.load %arg13[%c0_110, %c0_111] : memref<32x128xf32, #tpu.memory_space<vmem>>, vector<32x128xf32>
    %cst_112 = arith.constant dense<0.000000e+00> : vector<2x128xf32>
    %252 = tpu.matmul %250, %251, %cst_112 {dimension_numbers = #tpu.dot_dimension_numbers<[1], [0], [0], [1], [0, 0, 1, 1], [], []>} : vector<2x32xf32>, vector<32x128xf32>, vector<2x128xf32> -> vector<2x128xf32>
    %c0_113 = arith.constant 0 : index
    %c0_114 = arith.constant 0 : index
    %253 = vector.load %arg14[%c0_113, %c0_114] : memref<1x128xf32, #tpu.memory_space<vmem>>, vector<1x128xf32>
    %254 = vector.broadcast %253 : vector<1x128xf32> to vector<2x128xf32>
    %255 = arith.addf %252, %254 : vector<2x128xf32>
    %c0_115 = arith.constant 0 : index
    %c0_116 = arith.constant 0 : index
    %256 = vector.load %arg15[%c0_115, %c0_116] : memref<2x128xf32, #tpu.memory_space<vmem>>, vector<2x128xf32>
    tpu.vector_store %arg15[%c0_115, %c0_116], %255 {strides = array<i32>} : memref<2x128xf32, #tpu.memory_space<vmem>>, vector<2x128xf32>,
    return
  }
}

</mosaic_0001>

<bundles_post_ra>
// kernel: tpu_custom_call.1
= control target key start
LH: loop header
LB: loop body
LE: loop exit
PB: predicated region body
PF: predicated region fallthrough
CT: control target
= control target key end

     0   :  { %20 = vsyncpa [#allocation3], 0  ;;  %s5228_s0 = inlined_call_operand.hbm [shape: f32[2,8,32], index: 0, kind: input, shape index: {}]   ;;  %s5229_s1 = inlined_call_operand.vmem [shape: f32[2,32,96], index: 1, kind: input, shape index: {}]   ;;  %s5230_s2 = inlined_call_operand.vmem [shape: f32[2,1,96], index: 2, kind: input, shape index: {}]   ;;  %s5231_s3 = inlined_call_operand.vmem [shape: f32[2,32,32], index: 3, kind: input, shape index: {}]   ;;  %s5232_s4 = inlined_call_operand.vmem [shape: f32[2,1,32], index: 4, kind: input, shape index: {}]   ;;  %s5233_s5 = inlined_call_operand.vmem [shape: f32[2,1,32], index: 5, kind: input, shape index: {}]   ;;  %s5234_s6 = inlined_call_operand.vmem [shape: f32[2,1,32], index: 6, kind: input, shape index: {}]   ;;  %s5235_s7 = inlined_call_operand.vmem [shape: f32[2,32,64], index: 7, kind: input, shape index: {}]   ;;  %s5236_s8 = inlined_call_operand.vmem [shape: f32[2,1,64], index: 8, kind: input, shape index: {}]   ;;  %s5237_s9 = inlined_call_operand.vmem [shape: f32[2,64,32], index: 9, kind: input, shape index: {}]   ;;  %s5238_s10 = inlined_call_operand.vmem [shape: f32[2,1,32], index: 10, kind: input, shape index: {}]   ;;  %s5239_s11 = inlined_call_operand.vmem [shape: f32[2,1,32], index: 11, kind: input, shape index: {}]   ;;  %s5240_s12 = inlined_call_operand.vmem [shape: f32[2,1,32], index: 12, kind: input, shape index: {}]   ;;  %s5241_s13 = inlined_call_operand.hbm [shape: f32[32,128], index: 13, kind: input, shape index: {}]   ;;  %s5242_s14 = inlined_call_operand.vmem [shape: f32[1,128], index: 14, kind: input, shape index: {}]   ;;  %s5243_s15 = inlined_call_operand.hbm [shape: f32[2,128], index: 15, kind: output, shape index: {}]  }
   0x1   :  { %21 = vsyncpa [#allocation6], 0 }
   0x2   :  { %22 = vsyncpa [#allocation4], 0  ;;  %s4513_s18 = smov [#allocation2]  }
   0x3   :  { %s28_s19 = sshll.u32 %s4513_s18, 4  ;;  %s29_s19 = int_to_ptr.vmem [resolvable:$true] %s28_s19 }
   0x4   :  { %s4455_s20 = scalar_lea.vmem %s29_s19, 256  ;;  %p4460_p1 = scmp.lt.s32.totalorder %s29_s19, %s29_s19 }
   0x5   :  { %p4456_p0 = scmp.ne.s32.totalorder %s29_s19, %s4455_s20  ;;  %p4461_p2 = scmp.lt.s32.totalorder %s4455_s20, %s4455_s20 }
   0x7   :  { %p4462_p3 = por %p4461_p2, %p4460_p1 }
   0x9   :  { %p4463_p4 = pnand %p4462_p3, %p4456_p0 }
   0xb   :  { %4466 = shalt.err (!%p4463_p4)
}
   0xc   :  { %s4514_s21 = smov 128   ;;  %s4515_s22 = smov 8  }
   0xd   :  { %34 = dma.hbm_to_vmem [thread:$0]  %s5228_s0, 256, %s29_s19, [#allocation3], %s4514_s21, %s4514_s21, %s4515_s22  }
   0xe   :  { %s4516_s25 = smov [#allocation5]  }
   0xf   :  { %s64_s26 = sshll.u32 %s4516_s25, 4  ;;  %s65_s26 = int_to_ptr.vmem [resolvable:$true] %s64_s26 }
  0x10   :  { %s4475_s27 = scalar_lea.vmem %s65_s26, 512  ;;  %p4480_p6 = scmp.lt.s32.totalorder %s65_s26, %s65_s26 }
  0x11   :  { %p4476_p5 = scmp.ne.s32.totalorder %s65_s26, %s4475_s27  ;;  %p4481_p7 = scmp.lt.s32.totalorder %s4475_s27, %s4475_s27 }
  0x13   :  { %p4482_p8 = por %p4481_p7, %p4480_p6 }
  0x15   :  { %p4483_p9 = pnand %p4482_p8, %p4476_p5 }
  0x17   :  { %4486 = shalt.err (!%p4483_p9)
}
  0x18   :  { %70 = dma.hbm_to_vmem [thread:$0]  %s5241_s13, 512, %s65_s26, [#allocation6], %s4514_s21, %s4514_s21, %s4515_s22  }
  0x19   :  { %4507 = dma.done.wait [#allocation3], 256  }
  0x1a   :  { %4508 = vsyncadd [#allocation3], 4294967040 }
  0x1b   :  { %4509 = dma.done.wait [#allocation6], 512  }
  0x1c   :  { %4510 = vsyncadd [#allocation6], 4294966784  ;;  %vm92_vm0 = vcmask 261120   ;;  %v84_v0 = vld [vmem:[%s5229_s1 + $0x18] sm:$0xff]  ;;  %v83_v1 = vld [vmem:[%s5229_s1 + $0x10] sm:$0xff]  ;;  %v4517_v7 = vmov 0.0  }
  0x1d   :  { %4078 = vmatprep.subr.mxu0 %v84_v0  ;;  %v4621_v2 = vld [vmem:[#allocation2] sm:$0xff]  ;;  %v82_v3 = vld [vmem:[%s5229_s1 + $0x8] sm:$0xff]  ;;  %4089 = vmatprep.subr.mxu1 %v4517_v7  ;;  %s4518_s24 = smov 112   ;;  %s4519_s25 = smov 120   ;;  %vm4520_vm1 = vmmov 0   ;;  %vm190_vm2 = vcmask 64512  }
  0x1e   :  { %4079 = vmatpush3.msra.mxu0 %v84_v0  ;;  %4086 = vmatprep.mubr.msk.f32.mxu0 %vm92_vm0, %v4621_v2  ;;  %v81_v4 = vld [vmem:[%s5229_s1] sm:$0xff]  ;;  %v4631_v5 = vld [vmem:[#allocation2 + $0x8] sm:$0xff]  ;;  %s4521_s26 = smov 104   ;;  %s4522_s27 = smov 96   ;;  %vm1519_vm3 = vcmask 130048   ;;  %vm1522_vm4 = vcmask 195584  }
  0x1f   :  { %4080 = vmatprep.subr.mxu0 %v83_v1  ;;  %v3847_v8 = vld [vmem:[%s5230_s2] ss:$0 sm:$0xff]  ;;  %4091 = vmatprep.mubr.msk.f32.mxu1 %vm4520_vm1, %v4517_v7  ;;  %s4523_s28 = smov 64   ;;  %s4524_s20 = smov 16   ;;  %vm1773_vm5 = vcmask 523264   ;;  %vm3502_vm6 = vcmask 1041409  }
  0x20   :  { %4081 = vmatpush3.msra.mxu0 %v83_v1  ;;  %s4525_s21 = smov 24   ;;  %vm3683_vm7 = vcmask 261127   ;;  %vm3687_vm8 = vcmask 253952  }
  0x21   :  { %4082 = vmatprep.subr.mxu0 %v82_v3 }
  0x22   :  { %4083 = vmatpush3.msra.mxu0 %v82_v3 }
  0x23   :  { %4084 = vmatprep.subr.mxu0 %v81_v4 }
  0x24   :  { %4085 = vmatpush3.msra.mxu0 %v81_v4 }
  0x25   :  { %4087 = vmatmul.mubr.msk.f32.vlgmr.msra.gmra.mxu0 %vm92_vm0, %v4631_v5  ;;  %4109 = vmatprep.subr.mxu0 %v4517_v7 }
  0x26   :  { %4111 = vmatprep.mubr.msk.f32.mxu0 %vm4520_vm1, %v4517_v7 }
  0xe5   :  { %v4088_v6 = vpop.f32.mrf.mxu0 }
  0xe6   :  { %v4650_v11 = vadd.f32 %v4088_v6, %v3847_v8 }
  0xe7   :  { %v165_v9 = vpop.f32.mrf.mxu0 }
  0xe8   :  { %v4640_v10 = vadd.f32 %v3847_v8, %v165_v9 }
  0xea   :  { %180 = vrot.lane.b32.xlu1 %v4640_v10, %s4518_s24  ;;  %176 = vrot.lane.b32.xlu0 %v4640_v10, %s4519_s25 }
  0xee   :  { %182 = vrot.lane.b32.xlu1 %v4650_v11, %s4518_s24  ;;  %178 = vrot.lane.b32.xlu0 %v4650_v11, %s4519_s25 }
  0xf2   :  { %186 = vrot.lane.b32.xlu1 %v4650_v11, %s4521_s26  ;;  %184 = vrot.lane.b32.xlu0 %v4640_v10, %s4521_s26 }
  0xf6   :  { %265 = vrot.lane.b32.xlu1 %v4650_v11, %s4522_s27  ;;  %188 = vrot.lane.b32.xlu0 %v4640_v10, %s4522_s27 }
 0x15c   :  { %v4664_v12 = vpop.permute.xlu1 %180  ;;  %v4666_v13 = vpop.permute.xlu0 %176 }
 0x15d   :  { %341 = vrot.lane.b32.xlu0 %v4666_v13, %s4522_s27 }
 0x160   :  { %v4670_v14 = vpop.permute.xlu1 %182  ;;  %v4672_v15 = vpop.permute.xlu0 %178 }
 0x161   :  { %493 = vrot.lane.b32.xlu0 %v4664_v12, %s4522_s27  ;;  %417 = vrot.lane.b32.xlu1 %v4672_v15, %s4522_s27 }
 0x164   :  { %v4678_v16 = vpop.permute.xlu0 %184  ;;  %v4684_v17 = vpop.permute.xlu1 %186 }
 0x165   :  { %569 = vrot.lane.b32.xlu1 %v4670_v14, %s4522_s27  ;;  %645 = vrot.lane.b32.xlu0 %v4678_v16, %s4522_s27 }
 0x168   :  { %v189_v18 = vpop.permute.xlu0 %188  ;;  %v266_v19 = vpop.permute.xlu1 %265 }
 0x169   :  { %721 = vrot.lane.b32.xlu1 %v4684_v17, %s4522_s27  ;;  %4090 = vmatpush3.xpose.msk.msra.mxu1 %vm190_vm2, %v189_v18 }
 0x16a   :  { %4094 = vmatprep.subr.mxu1 %v4517_v7 }
 0x16c   :  { %4092 = vmatmul.mubr.msk.f32.vlgmr.msra.gmra.mxu1 %vm190_vm2, %v4640_v10 }
 0x16d   :  { %4095 = vmatpush3.xpose.msk.msra.mxu1 %vm190_vm2, %v266_v19  ;;  %4096 = vmatprep.mubr.msk.f32.mxu1 %vm4520_vm1, %v4517_v7 }
 0x16e   :  { %4099 = vmatprep.subr.mxu1 %v4517_v7 }
 0x170   :  { %4097 = vmatmul.mubr.msk.f32.vlgmr.msra.gmra.mxu1 %vm190_vm2, %v4650_v11 }
 0x171   :  { %4101 = vmatprep.mubr.msk.f32.mxu1 %vm4520_vm1, %v4517_v7 }
 0x1cf   :  { %v342_v20 = vpop.permute.xlu0 %341 }
 0x1d0   :  { %4100 = vmatpush3.xpose.msk.msra.mxu1 %vm190_vm2, %v342_v20 }
 0x1d1   :  { %4104 = vmatprep.subr.mxu1 %v4517_v7 }
 0x1d3   :  { %v418_v21 = vpop.permute.xlu1 %417  ;;  %4102 = vmatmul.mubr.msk.f32.vlgmr.msra.gmra.mxu1 %vm190_vm2, %v4666_v13  ;;  %v494_v22 = vpop.permute.xlu0 %493 }
 0x1d4   :  { %4105 = vmatpush3.xpose.msk.msra.mxu1 %vm190_vm2, %v418_v21  ;;  %4110 = vmatpush3.xpose.msk.msra.mxu0 %vm190_vm2, %v494_v22 }
 0x1d5   :  { %4106 = vmatprep.mubr.msk.f32.mxu1 %vm4520_vm1, %v4517_v7  ;;  %4114 = vmatprep.subr.mxu1 %v4517_v7 }
 0x1d6   :  { %4119 = vmatprep.subr.mxu0 %v4517_v7 }
 0x1d7   :  { %v570_v23 = vpop.permute.xlu1 %569  ;;  %4107 = vmatmul.mubr.msk.f32.vlgmr.msra.gmra.mxu1 %vm190_vm2, %v4672_v15  ;;  %4112 = vmatmul.mubr.msk.f32.vlgmr.msra.gmra.mxu0 %vm190_vm2, %v4664_v12  ;;  %v646_v24 = vpop.permute.xlu0 %645 }
 0x1d8   :  { %4115 = vmatpush3.xpose.msk.msra.mxu1 %vm190_vm2, %v570_v23  ;;  %4120 = vmatpush3.xpose.msk.msra.mxu0 %vm190_vm2, %v646_v24 }
 0x1d9   :  { %4116 = vmatprep.mubr.msk.f32.mxu1 %vm4520_vm1, %v4517_v7  ;;  %4121 = vmatprep.mubr.msk.f32.mxu0 %vm4520_vm1, %v4517_v7 }
 0x1da   :  { %4124 = vmatprep.subr.mxu1 %v4517_v7  ;;  %4129 = vmatprep.subr.mxu0 %v4517_v7 }
 0x1db   :  { %v722_v25 = vpop.permute.xlu1 %721  ;;  %4117 = vmatmul.mubr.msk.f32.vlgmr.msra.gmra.mxu1 %vm190_vm2, %v4670_v14  ;;  %4122 = vmatmul.mubr.msk.f32.vlgmr.msra.gmra.mxu0 %vm190_vm2, %v4678_v16 }
 0x1dc   :  { %4125 = vmatpush3.xpose.msk.msra.mxu1 %vm190_vm2, %v722_v25  ;;  %4126 = vmatprep.mubr.msk.f32.mxu1 %vm4520_vm1, %v4517_v7 }
 0x1dd   :  { %4134 = vmatprep.subr.mxu1 %v4517_v7  ;;  %4131 = vmatprep.mubr.msk.f32.mxu0 %vm4520_vm1, %v4517_v7 }
 0x1df   :  { %4127 = vmatmul.mubr.msk.f32.vlgmr.msra.gmra.mxu1 %vm190_vm2, %v4684_v17 }
 0x1e0   :  { %4136 = vmatprep.mubr.msk.f32.mxu1 %vm4520_vm1, %v4517_v7 }
 0x22c   :  { %v261_v26 = vpop.f32.mrf.mxu1 }
 0x22d   :  { %v797_v27 = vsel %vm190_vm2, %v261_v26, -inf }
 0x22e   :  { %798 = vmax.xlane.f32.xlu0 %v797_v27  ;;  %v4093_v28 = vpop.f32.mrf.mxu1 }
 0x230   :  { %v337_v29 = vpop.f32.mrf.mxu1 }
 0x231   :  { %v800_v30 = vsel %vm190_vm2, %v337_v29, -inf }
 0x232   :  { %801 = vmax.xlane.f32.xlu1 %v800_v30  ;;  %v4098_v31 = vpop.f32.mrf.mxu1 }
 0x293   :  { %v413_v32 = vpop.f32.mrf.mxu1 }
 0x294   :  { %v803_v33 = vsel %vm190_vm2, %v413_v32, -inf }
 0x295   :  { %804 = vmax.xlane.f32.xlu0 %v803_v33  ;;  %v4103_v34 = vpop.f32.mrf.mxu1 }
 0x297   :  { %v489_v35 = vpop.f32.mrf.mxu1  ;;  %v565_v36 = vpop.f32.mrf.mxu0 }
 0x298   :  { %v806_v37 = vsel %vm190_vm2, %v489_v35, -inf  ;;  %v809_v38 = vsel %vm190_vm2, %v565_v36, -inf }
 0x299   :  { %807 = vmax.xlane.f32.xlu0 %v806_v37  ;;  %v4108_v39 = vpop.f32.mrf.mxu1  ;;  %810 = vmax.xlane.f32.xlu1 %v809_v38  ;;  %v4113_v40 = vpop.f32.mrf.mxu0 }
 0x29b   :  { %v641_v41 = vpop.f32.mrf.mxu1  ;;  %v717_v42 = vpop.f32.mrf.mxu0 }
 0x29c   :  { %v812_v43 = vsel %vm190_vm2, %v641_v41, -inf  ;;  %v815_v44 = vsel %vm190_vm2, %v717_v42, -inf }
 0x29d   :  { %813 = vmax.xlane.f32.xlu0 %v812_v43  ;;  %v4118_v45 = vpop.f32.mrf.mxu1  ;;  %816 = vmax.xlane.f32.xlu1 %v815_v44  ;;  %v4123_v46 = vpop.f32.mrf.mxu0 }
 0x29f   :  { %v793_v47 = vpop.f32.mrf.mxu1 }
 0x2a0   :  { %v818_v48 = vsel %vm190_vm2, %v793_v47, -inf }
 0x2a1   :  { %819 = vmax.xlane.f32.xlu0 %v818_v48  ;;  %v4128_v49 = vpop.f32.mrf.mxu1 }
 0x2ae   :  { %885 = vrot.lane.b32.xlu1 %v4640_v10, %s4523_s28 }
 0x2b2   :  { %1037 = vrot.lane.b32.xlu1 %v4666_v13, %s4523_s28 }
 0x2b6   :  { %1113 = vrot.lane.b32.xlu1 %v4672_v15, %s4523_s28 }
 0x2b7   :  { %961 = vrot.lane.b32.xlu0 %v4650_v11, %s4523_s28  ;;  %v799_v52 = vpop.xlane.xlu0 %798 }
 0x2b8   :  { %v821_v53 = vsub.f32 %v261_v26, %v799_v52 }
 0x2ba   :  { %1265 = vrot.lane.b32.xlu1 %v4670_v14, %s4523_s28  ;;  %v829_v55 = vmul.f32 1.442695, %v821_v53 }
 0x2bb   :  { %1189 = vrot.lane.b32.xlu0 %v4664_v12, %s4523_s28  ;;  %v802_v50 = vpop.xlane.xlu1 %801 }
 0x2bc   :  { %v822_v51 = vsub.f32 %v337_v29, %v802_v50 }
 0x2be   :  { %v831_v54 = vmul.f32 1.442695, %v822_v51 }
 0x2c0   :  { %4367 = vpow2.f32 %v831_v54 }
 0x2c1   :  { %4369 = vpow2.f32 %v829_v55 }
 0x2cd   :  { %v4756_v56 = vpop.eup %4367 }
 0x2ce   :  { %v848_v57 = vsel %vm190_vm2, %v4756_v56, 0.0  ;;  %v4760_v58 = vpop.eup %4369 }
 0x2cf   :  { %v845_v59 = vsel %vm190_vm2, %v4760_v58, 0.0 }
 0x2da   :  { %849 = vadd.xlane.f32.xlu0 %v848_v57 }
 0x2de   :  { %846 = vadd.xlane.f32.xlu1 %v845_v59 }
 0x31e   :  { %v805_v60 = vpop.xlane.xlu0 %804 }
 0x31f   :  { %v823_v61 = vsub.f32 %v413_v32, %v805_v60 }
 0x321   :  { %v833_v62 = vmul.f32 1.442695, %v823_v61 }
 0x322   :  { %v811_v63 = vpop.xlane.xlu1 %810  ;;  %v808_v0 = vpop.xlane.xlu0 %807 }
 0x323   :  { %4371 = vpow2.f32 %v833_v62  ;;  %v825_v1 = vsub.f32 %v565_v36, %v811_v63  ;;  %v824_v3 = vsub.f32 %v489_v35, %v808_v0 }
 0x325   :  { %v837_v4 = vmul.f32 1.442695, %v825_v1  ;;  %v835_v6 = vmul.f32 1.442695, %v824_v3  ;;  %v1528_v1 = vld [vmem:[%s5231_s3 + $0x18] sm:$0xff]  ;;  %v1527_v3 = vld [vmem:[%s5231_s3 + $0x10] sm:$0xff] }
 0x326   :  { %v817_v8 = vpop.xlane.xlu1 %816  ;;  %v814_v9 = vpop.xlane.xlu0 %813 }
 0x327   :  { %4373 = vpow2.f32 %v837_v4  ;;  %v827_v10 = vsub.f32 %v717_v42, %v817_v8  ;;  %v826_v11 = vsub.f32 %v641_v41, %v814_v9  ;;  %v1526_v4 = vld [vmem:[%s5231_s3 + $0x8] sm:$0xff]  ;;  %v1525_v8 = vld [vmem:[%s5231_s3] sm:$0xff] }
 0x328   :  { %4375 = vpow2.f32 %v835_v6 }
 0x329   :  { %v841_v12 = vmul.f32 1.442695, %v827_v10  ;;  %v839_v13 = vmul.f32 1.442695, %v826_v11 }
 0x32a   :  { %v886_v14 = vpop.permute.xlu1 %885  ;;  %v820_v15 = vpop.xlane.xlu0 %819 }
 0x32b   :  { %4377 = vpow2.f32 %v841_v12  ;;  %v828_v18 = vsub.f32 %v793_v47, %v820_v15  ;;  %4130 = vmatpush3.msra.mxu0 %v886_v14 }
 0x32c   :  { %4379 = vpow2.f32 %v839_v13  ;;  %4139 = vmatprep.subr.mxu0 %v4517_v7 }
 0x32d   :  { %v843_v19 = vmul.f32 1.442695, %v828_v18 }
 0x32e   :  { %v962_v20 = vpop.permute.xlu0 %961  ;;  %v1038_v33 = vpop.permute.xlu1 %1037 }
 0x32f   :  { %4381 = vpow2.f32 %v843_v19  ;;  %4135 = vmatpush3.msra.mxu1 %v962_v20 }
 0x330   :  { %v4372_v21 = vpop.eup %4371  ;;  %4144 = vmatprep.subr.mxu1 %v4517_v7 }
 0x331   :  { %v851_v22 = vsel %vm190_vm2, %v4372_v21, 0.0 }
 0x332   :  { %852 = vadd.xlane.f32.xlu1 %v851_v22  ;;  %v1114_v34 = vpop.permute.xlu1 %1113  ;;  %v1190_v35 = vpop.permute.xlu0 %1189 }
 0x334   :  { %v4374_v23 = vpop.eup %4373 }
 0x335   :  { %v4376_v24 = vpop.eup %4375  ;;  %v857_v25 = vsel %vm190_vm2, %v4374_v23, 0.0 }
 0x336   :  { %858 = vadd.xlane.f32.xlu1 %v857_v25  ;;  %v854_v26 = vsel %vm190_vm2, %v4376_v24, 0.0  ;;  %v1266_v36 = vpop.permute.xlu1 %1265 }
 0x337   :  { %855 = vadd.xlane.f32.xlu0 %v854_v26 }
 0x338   :  { %v4378_v27 = vpop.eup %4377 }
 0x339   :  { %v4769_v28 = vpop.eup %4379  ;;  %v863_v29 = vsel %vm190_vm2, %v4378_v27, 0.0 }
 0x33a   :  { %864 = vadd.xlane.f32.xlu1 %v863_v29  ;;  %v860_v30 = vsel %vm190_vm2, %v4769_v28, 0.0 }
 0x33b   :  { %861 = vadd.xlane.f32.xlu0 %v860_v30 }
 0x33c   :  { %v4774_v31 = vpop.eup %4381 }
 0x33d   :  { %v866_v32 = vsel %vm190_vm2, %v4774_v31, 0.0 }
 0x33f   :  { %867 = vadd.xlane.f32.xlu0 %v866_v32 }
 0x34b   :  { %1417 = vrot.lane.b32.xlu1 %v4684_v17, %s4523_s28 }
 0x355   :  { %1341 = vrot.lane.b32.xlu0 %v4678_v16, %s4523_s28 }
 0x363   :  { %v850_v37 = vpop.xlane.xlu0 %849 }
 0x364   :  { %4383 = vrcp.f32 %v850_v37 }
 0x367   :  { %v847_v38 = vpop.xlane.xlu1 %846 }
 0x368   :  { %4385 = vrcp.f32 %v847_v38 }
 0x371   :  { %v4384_v39 = vpop.eup %4383 }
 0x372   :  { %v878_v40 = vmul.f32 %v4384_v39, %v4756_v56 }
 0x374   :  { %4137 = vmatmul.mubr.msk.f32.vlgmr.msra.gmra.mxu1 %vm190_vm2, %v878_v40 }
 0x375   :  { %v4386_v41 = vpop.eup %4385  ;;  %4145 = vmatpush3.msra.mxu1 %v1114_v34  ;;  %4146 = vmatprep.mubr.msk.f32.mxu1 %vm4520_vm1, %v4517_v7  ;;  %v3874_v34 = vld [vmem:[%s5232_s4] ss:$0 sm:$0xff] }
 0x376   :  { %v877_v16 = vmul.f32 %v4386_v41, %v4760_v58  ;;  %4154 = vmatprep.subr.mxu1 %v4517_v7 }
 0x378   :  { %4132 = vmatmul.mubr.msk.f32.vlgmr.msra.gmra.mxu0 %vm190_vm2, %v877_v16 }
 0x379   :  { %4140 = vmatpush3.msra.mxu0 %v1038_v33  ;;  %4141 = vmatprep.mubr.msk.f32.mxu0 %vm4520_vm1, %v4517_v7 }
 0x37a   :  { %4149 = vmatprep.subr.mxu0 %v4517_v7 }
 0x3bb   :  { %v853_v17 = vpop.xlane.xlu1 %852 }
 0x3bc   :  { %4387 = vrcp.f32 %v853_v17 }
 0x3bf   :  { %v859_v42 = vpop.xlane.xlu1 %858 }
 0x3c0   :  { %4389 = vrcp.f32 %v859_v42  ;;  %v856_v43 = vpop.xlane.xlu0 %855 }
 0x3c1   :  { %4391 = vrcp.f32 %v856_v43 }
 0x3c3   :  { %v865_v44 = vpop.xlane.xlu1 %864 }
 0x3c4   :  { %4393 = vrcp.f32 %v865_v44  ;;  %v862_v45 = vpop.xlane.xlu0 %861 }
 0x3c5   :  { %4395 = vrcp.f32 %v862_v45 }
 0x3c7   :  { %v1418_v58 = vpop.permute.xlu1 %1417 }
 0x3c8   :  { %v868_v46 = vpop.xlane.xlu0 %867 }
 0x3c9   :  { %v4388_v47 = vpop.eup %4387  ;;  %4397 = vrcp.f32 %v868_v46 }
 0x3ca   :  { %v879_v48 = vmul.f32 %v4388_v47, %v4372_v21 }
 0x3cc   :  { %4142 = vmatmul.mubr.msk.f32.vlgmr.msra.gmra.mxu0 %vm190_vm2, %v879_v48  ;;  %v1342_v53 = vpop.permute.xlu0 %1341 }
 0x3cd   :  { %v4390_v49 = vpop.eup %4389  ;;  %4150 = vmatpush3.msra.mxu0 %v1190_v35  ;;  %4151 = vmatprep.mubr.msk.f32.mxu0 %vm4520_vm1, %v4517_v7 }
 0x3ce   :  { %v4392_v50 = vpop.eup %4391  ;;  %4159 = vmatprep.subr.mxu0 %v4517_v7  ;;  %v881_v51 = vmul.f32 %v4390_v49, %v4374_v23 }
 0x3cf   :  { %v880_v52 = vmul.f32 %v4392_v50, %v4376_v24  ;;  %v1666_v50 = vld [vmem:[%s5235_s7 + $0x10] sm:$0xff] }
 0x3d0   :  { %4152 = vmatmul.mubr.msk.f32.vlgmr.msra.gmra.mxu0 %vm190_vm2, %v881_v51  ;;  %v1665_v51 = vld [vmem:[%s5235_s7 + $0x8] sm:$0xff] }
 0x3d1   :  { %v4394_v54 = vpop.eup %4393  ;;  %4147 = vmatmul.mubr.msk.f32.vlgmr.msra.gmra.mxu1 %vm190_vm2, %v880_v52  ;;  %4160 = vmatpush3.msra.mxu0 %v1342_v53  ;;  %v1664_v52 = vld [vmem:[%s5235_s7] sm:$0xff]  ;;  %v1765_v53 = vld [vmem:[%s5237_s9 + $0x38] sm:$0xff] }
 0x3d2   :  { %v4396_v55 = vpop.eup %4395  ;;  %4155 = vmatpush3.msra.mxu1 %v1266_v36  ;;  %4156 = vmatprep.mubr.msk.f32.mxu1 %vm4520_vm1, %v4517_v7  ;;  %v883_v56 = vmul.f32 %v4394_v54, %v4378_v27  ;;  %v1764_v54 = vld [vmem:[%s5237_s9 + $0x30] sm:$0xff] }
 0x3d3   :  { %4161 = vmatprep.mubr.msk.f32.mxu0 %vm4520_vm1, %v4517_v7  ;;  %4164 = vmatprep.subr.mxu1 %v4517_v7  ;;  %v882_v57 = vmul.f32 %v4396_v55, %v4769_v28  ;;  %v1763_v55 = vld [vmem:[%s5237_s9 + $0x28] sm:$0xff] }
 0x3d4   :  { %4162 = vmatmul.mubr.msk.f32.vlgmr.msra.gmra.mxu0 %vm190_vm2, %v883_v56  ;;  %4169 = vmatprep.subr.mxu0 %v1528_v1  ;;  %v1762_v56 = vld [vmem:[%s5237_s9 + $0x20] sm:$0xff] }
 0x3d5   :  { %4157 = vmatmul.mubr.msk.f32.vlgmr.msra.gmra.mxu1 %vm190_vm2, %v882_v57  ;;  %4170 = vmatpush3.msra.mxu0 %v1528_v1 }
 0x3d6   :  { %v4398_v59 = vpop.eup %4397  ;;  %4165 = vmatpush3.msra.mxu1 %v1418_v58  ;;  %4166 = vmatprep.mubr.msk.f32.mxu1 %vm4520_vm1, %v4517_v7 }
 0x3d7   :  { %v884_v60 = vmul.f32 %v4398_v59, %v4774_v31  ;;  %4171 = vmatprep.subr.mxu0 %v1527_v3 }
 0x3d8   :  { %4172 = vmatpush3.msra.mxu0 %v1527_v3  ;;  %v3878_v3 = vld [vmem:[%s5234_s6] ss:$0 sm:$0xff] }
 0x3d9   :  { %4167 = vmatmul.mubr.msk.f32.vlgmr.msra.gmra.mxu1 %vm190_vm2, %v884_v60  ;;  %4173 = vmatprep.subr.mxu0 %v1526_v4 }
 0x3da   :  { %4174 = vmatpush3.msra.mxu0 %v1526_v4 }
 0x3db   :  { %4175 = vmatprep.subr.mxu0 %v1525_v8 }
 0x3dc   :  { %4176 = vmatpush3.msra.mxu0 %v1525_v8 }
 0x3dd   :  { %4191 = vmatprep.subr.mxu0 %v1765_v53 }
 0x434   :  { %v1033_v61 = vpop.f32.mrf.mxu1 }
 0x436   :  { %v4138_v62 = vpop.f32.mrf.mxu1 }
 0x438   :  { %v957_v63 = vpop.f32.mrf.mxu0 }
 0x43a   :  { %v4133_v0 = vpop.f32.mrf.mxu0 }
 0x43b   :  { %v3877_v0 = vld [vmem:[%s5233_s5] ss:$0 sm:$0xff] }
 0x48c   :  { %v1109_v6 = vpop.f32.mrf.mxu0 }
 0x48d   :  { %1495 = vrot.lane.b32.xlu0 %v1109_v6, %s4515_s22 }
 0x48e   :  { %v4143_v9 = vpop.f32.mrf.mxu0 }
 0x490   :  { %v1261_v10 = vpop.f32.mrf.mxu0 }
 0x491   :  { %v1185_v11 = vpop.f32.mrf.mxu1  ;;  %1503 = vrot.lane.b32.xlu0 %v1261_v10, %s4524_s20 }
 0x492   :  { %1497 = vrot.lane.b32.xlu1 %v1185_v11, %s4515_s22  ;;  %v4153_v12 = vpop.f32.mrf.mxu0 }
 0x493   :  { %v4148_v13 = vpop.f32.mrf.mxu1  ;;  %v1761_v12 = vld [vmem:[%s5237_s9 + $0x18] sm:$0xff] }
 0x494   :  { %v1413_v14 = vpop.f32.mrf.mxu0  ;;  %v1760_v13 = vld [vmem:[%s5237_s9 + $0x10] sm:$0xff] }
 0x495   :  { %v1337_v15 = vpop.f32.mrf.mxu1  ;;  %1511 = vrot.lane.b32.xlu0 %v1413_v14, %s4525_s21  ;;  %v1759_v14 = vld [vmem:[%s5237_s9 + $0x8] sm:$0xff] }
 0x496   :  { %1505 = vrot.lane.b32.xlu1 %v1337_v15, %s4524_s20  ;;  %v4163_v18 = vpop.f32.mrf.mxu0  ;;  %v1758_v15 = vld [vmem:[%s5237_s9] sm:$0xff] }
 0x497   :  { %v4158_v19 = vpop.f32.mrf.mxu1  ;;  %v3879_v18 = vld [vmem:[%s5236_s8] ss:$0 sm:$0xff] }
 0x499   :  { %v1489_v20 = vpop.f32.mrf.mxu1 }
 0x49a   :  { %1513 = vrot.lane.b32.xlu1 %v1489_v20, %s4525_s21 }
 0x49b   :  { %v4168_v21 = vpop.f32.mrf.mxu1 }
 0x4ff   :  { %v1496_v22 = vpop.permute.xlu0 %1495 }
 0x500   :  { %v1517_v25 = vsel %vm190_vm2, %v957_v63, %v1496_v22 }
 0x503   :  { %v1504_v23 = vpop.permute.xlu0 %1503 }
 0x504   :  { %v1498_v24 = vpop.permute.xlu1 %1497  ;;  %v1520_v26 = vsel %vm1519_vm3, %v1517_v25, %v1504_v23  ;;  %v3882_v25 = vld [vmem:[%s5238_s10] ss:$0 sm:$0xff] }
 0x505   :  { %v1518_v30 = vsel %vm190_vm2, %v1033_v61, %v1498_v24 }
 0x507   :  { %v1512_v27 = vpop.permute.xlu0 %1511 }
 0x508   :  { %v1506_v28 = vpop.permute.xlu1 %1505  ;;  %v1523_v29 = vsel %vm1522_vm4, %v1520_v26, %v1512_v27 }
 0x509   :  { %4177 = vmatprep.mubr.msk.f32.mxu0 %vm92_vm0, %v1523_v29  ;;  %v1521_v31 = vsel %vm1519_vm3, %v1518_v30, %v1506_v28 }
 0x50c   :  { %v1514_v32 = vpop.permute.xlu1 %1513 }
 0x50d   :  { %v1524_v33 = vsel %vm1522_vm4, %v1521_v31, %v1514_v32 }
 0x50e   :  { %4178 = vmatmul.mubr.msk.f32.vlgmr.msra.gmra.mxu0 %vm92_vm0, %v1524_v33 }
 0x50f   :  { %4192 = vmatpush3.msra.mxu0 %v1765_v53 }
 0x510   :  { %4193 = vmatprep.subr.mxu0 %v1764_v54 }
 0x511   :  { %4194 = vmatpush3.msra.mxu0 %v1764_v54 }
 0x512   :  { %4195 = vmatprep.subr.mxu0 %v1763_v55 }
 0x513   :  { %4196 = vmatpush3.msra.mxu0 %v1763_v55 }
 0x514   :  { %4197 = vmatprep.subr.mxu0 %v1762_v56 }
 0x515   :  { %4198 = vmatpush3.msra.mxu0 %v1762_v56  ;;  %v3886_v56 = vld [vmem:[%s5240_s12] ss:$0 sm:$0xff] }
 0x516   :  { %4199 = vmatprep.subr.mxu0 %v1761_v12 }
 0x517   :  { %4200 = vmatpush3.msra.mxu0 %v1761_v12 }
 0x518   :  { %4201 = vmatprep.subr.mxu0 %v1760_v13 }
 0x519   :  { %4202 = vmatpush3.msra.mxu0 %v1760_v13 }
 0x51a   :  { %4203 = vmatprep.subr.mxu0 %v1759_v14 }
 0x51b   :  { %4204 = vmatpush3.msra.mxu0 %v1759_v14 }
 0x51c   :  { %4205 = vmatprep.subr.mxu0 %v1758_v15 }
 0x51d   :  { %4206 = vmatpush3.msra.mxu0 %v1758_v15 }
 0x51e   :  { %4231 = vmatprep.subr.mxu0 %v4517_v7 }
 0x5ce   :  { %v4179_v35 = vpop.f32.mrf.mxu0 }
 0x5cf   :  { %v1614_v36 = vadd.f32 %v4179_v35, %v3874_v34 }
 0x5d0   :  { %v1608_v37 = vpop.f32.mrf.mxu0 }
 0x5d1   :  { %v1609_v38 = vadd.f32 %v3874_v34, %v1608_v37  ;;  %v1618_v39 = vadd.f32 %v1614_v36, %v4631_v5 }
 0x5d3   :  { %v1624_v40 = vsel %vm92_vm0, %v1618_v39, 0.0  ;;  %v1617_v41 = vadd.f32 %v1609_v38, %v4621_v2  ;;  %v1667_v2 = vld [vmem:[%s5235_s7 + $0x18] sm:$0xff] }
 0x5d4   :  { %1625 = vadd.xlane.f32.xlu1 %v1624_v40  ;;  %4180 = vmatprep.subr.mxu1 %v1667_v2 }
 0x5d5   :  { %v1621_v16 = vsel %vm92_vm0, %v1617_v41, 0.0  ;;  %4181 = vmatpush3.msra.mxu1 %v1667_v2 }
 0x5d6   :  { %1622 = vadd.xlane.f32.xlu0 %v1621_v16  ;;  %4182 = vmatprep.subr.mxu1 %v1666_v50 }
 0x5d7   :  { %4183 = vmatpush3.msra.mxu1 %v1666_v50 }
 0x5d8   :  { %4184 = vmatprep.subr.mxu1 %v1665_v51 }
 0x5d9   :  { %4185 = vmatpush3.msra.mxu1 %v1665_v51  ;;  %v3885_v51 = vld [vmem:[%s5239_s11] ss:$0 sm:$0xff] }
 0x5da   :  { %4186 = vmatprep.subr.mxu1 %v1664_v52 }
 0x5db   :  { %4187 = vmatpush3.msra.mxu1 %v1664_v52 }
 0x65d   :  { %v1626_v17 = vpop.xlane.xlu1 %1625 }
 0x65e   :  { %v1629_v42 = vmul.f32 0.03125, %v1626_v17 }
 0x65f   :  { %v1623_v43 = vpop.xlane.xlu0 %1622 }
 0x660   :  { %v1628_v44 = vmul.f32 0.03125, %v1623_v43  ;;  %v1631_v45 = vsub.f32 %v1618_v39, %v1629_v42  ;;  %v3890_v42 = vld [vmem:[%s5229_s1 + $0x38] sm:$0xff]  ;;  %v3889_v43 = vld [vmem:[%s5229_s1 + $0x30] sm:$0xff] }
 0x661   :  { %4210 = vmatprep.subr.mxu1 %v3890_v42 }
 0x662   :  { %v1630_v46 = vsub.f32 %v1617_v41, %v1628_v44  ;;  %v1633_v49 = vmul.f32 %v1631_v45, %v1631_v45  ;;  %v3888_v44 = vld [vmem:[%s5229_s1 + $0x28] sm:$0xff] }
 0x664   :  { %v1632_v47 = vmul.f32 %v1630_v46, %v1630_v46  ;;  %v1637_v5 = vsel %vm92_vm0, %v1633_v49, 0.0 }
 0x666   :  { %v1634_v48 = vsel %vm92_vm0, %v1632_v47, 0.0 }
 0x667   :  { %1635 = vadd.xlane.f32.xlu0 %v1634_v48 }
 0x66b   :  { %1638 = vadd.xlane.f32.xlu0 %v1637_v5 }
 0x6f0   :  { %v1636_v57 = vpop.xlane.xlu0 %1635 }
 0x6f1   :  { %v1640_v58 = vmul.f32 0.03125, %v1636_v57 }
 0x6f3   :  { %v1642_v59 = vadd.f32 1e-05, %v1640_v58 }
 0x6f4   :  { %v1639_v60 = vpop.xlane.xlu0 %1638 }
 0x6f5   :  { %4399 = vrsqrt.f32 %v1642_v59  ;;  %v1641_v61 = vmul.f32 0.03125, %v1639_v60  ;;  %v3892_v60 = vld [vmem:[%s5230_s2 + $0x1] ss:$0 sm:$0xff] }
 0x6f7   :  { %v1643_v62 = vadd.f32 1e-05, %v1641_v61 }
 0x6f9   :  { %4401 = vrsqrt.f32 %v1643_v62 }
 0x702   :  { %v4400_v63 = vpop.eup %4399 }
 0x703   :  { %v1646_v1 = vmul.f32 %v4400_v63, %v1630_v46 }
 0x705   :  { %v1654_v4 = vmul.f32 %v3877_v0, %v1646_v1 }
 0x706   :  { %v4402_v6 = vpop.eup %4401 }
 0x707   :  { %v1647_v8 = vmul.f32 %v4402_v6, %v1631_v45  ;;  %v1662_v9 = vadd.f32 %v3878_v3, %v1654_v4  ;;  %v3887_v45 = vld [vmem:[%s5229_s1 + $0x20] sm:$0xff] }
 0x709   :  { %v1655_v10 = vmul.f32 %v3877_v0, %v1647_v8  ;;  %4188 = vmatprep.mubr.msk.f32.mxu1 %vm92_vm0, %v1662_v9 }
 0x70b   :  { %v1663_v11 = vadd.f32 %v3878_v3, %v1655_v10 }
 0x70d   :  { %4189 = vmatmul.mubr.msk.f32.vlgmr.msra.gmra.mxu1 %vm92_vm0, %v1663_v11 }
 0x70e   :  { %4211 = vmatpush3.msra.mxu1 %v3890_v42 }
 0x70f   :  { %4212 = vmatprep.subr.mxu1 %v3889_v43 }
 0x710   :  { %4213 = vmatpush3.msra.mxu1 %v3889_v43 }
 0x711   :  { %4214 = vmatprep.subr.mxu1 %v3888_v44 }
 0x712   :  { %4215 = vmatpush3.msra.mxu1 %v3888_v44 }
 0x713   :  { %4216 = vmatprep.subr.mxu1 %v3887_v45 }
 0x714   :  { %4217 = vmatpush3.msra.mxu1 %v3887_v45 }
 0x715   :  { %4221 = vmatprep.subr.mxu1 %v4517_v7 }
 0x7cd   :  { %v4190_v19 = vpop.f32.mrf.mxu1 }
 0x7ce   :  { %v1753_v20 = vadd.f32 %v4190_v19, %v3879_v18 }
 0x7cf   :  { %v1747_v21 = vpop.f32.mrf.mxu1 }
 0x7d0   :  { %v1748_v22 = vadd.f32 %v3879_v18, %v1747_v21  ;;  %v1757_v24 = vmax.f32 %v1753_v20, 0.0 }
 0x7d2   :  { %v1756_v23 = vmax.f32 %v1748_v22, 0.0 }
 0x7d4   :  { %4207 = vmatprep.mubr.msk.f32.mxu0 %vm1773_vm5, %v1756_v23 }
 0x7d5   :  { %4208 = vmatmul.mubr.msk.f32.vlgmr.msra.gmra.mxu0 %vm1773_vm5, %v1757_v24 }
 0x7d6   :  { %4233 = vmatprep.mubr.msk.f32.mxu0 %vm4520_vm1, %v4517_v7 }
 0x895   :  { %v4209_v26 = vpop.f32.mrf.mxu0 }
 0x896   :  { %v1852_v27 = vadd.f32 %v4209_v26, %v3882_v25 }
 0x897   :  { %v1846_v28 = vpop.f32.mrf.mxu0 }
 0x898   :  { %v1847_v29 = vadd.f32 %v3882_v25, %v1846_v28  ;;  %v1856_v30 = vadd.f32 %v1852_v27, %v1663_v11 }
 0x89a   :  { %v1862_v31 = vsel %vm92_vm0, %v1856_v30, 0.0  ;;  %v1855_v32 = vadd.f32 %v1847_v29, %v1662_v9 }
 0x89b   :  { %1863 = vadd.xlane.f32.xlu0 %v1862_v31 }
 0x89c   :  { %v1859_v33 = vsel %vm92_vm0, %v1855_v32, 0.0 }
 0x89d   :  { %1860 = vadd.xlane.f32.xlu1 %v1859_v33 }
 0x924   :  { %v1864_v34 = vpop.xlane.xlu0 %1863 }
 0x925   :  { %v1866_v35 = vmul.f32 0.03125, %v1864_v34 }
 0x926   :  { %v1861_v36 = vpop.xlane.xlu1 %1860 }
 0x927   :  { %v1868_v37 = vsub.f32 %v1856_v30, %v1866_v35  ;;  %v1865_v38 = vmul.f32 0.03125, %v1861_v36 }
 0x929   :  { %v1867_v39 = vsub.f32 %v1855_v32, %v1865_v38  ;;  %v1870_v40 = vmul.f32 %v1868_v37, %v1868_v37 }
 0x92b   :  { %v1874_v41 = vsel %vm92_vm0, %v1870_v40, 0.0  ;;  %v1869_v16 = vmul.f32 %v1867_v39, %v1867_v39 }
 0x92c   :  { %1875 = vadd.xlane.f32.xlu0 %v1874_v41 }
 0x92d   :  { %v1871_v17 = vsel %vm92_vm0, %v1869_v16, 0.0 }
 0x92e   :  { %1872 = vadd.xlane.f32.xlu1 %v1871_v17 }
 0x9b5   :  { %v1876_v46 = vpop.xlane.xlu0 %1875 }
 0x9b6   :  { %v1878_v47 = vmul.f32 0.03125, %v1876_v46 }
 0x9b7   :  { %v1873_v48 = vpop.xlane.xlu1 %1872 }
 0x9b8   :  { %v1880_v49 = vadd.f32 1e-05, %v1878_v47  ;;  %v1877_v5 = vmul.f32 0.03125, %v1873_v48 }
 0x9ba   :  { %4403 = vrsqrt.f32 %v1880_v49  ;;  %v1879_v2 = vadd.f32 1e-05, %v1877_v5 }
 0x9bc   :  { %4405 = vrsqrt.f32 %v1879_v2 }
 0x9c7   :  { %v4404_v50 = vpop.eup %4403 }
 0x9c8   :  { %v1884_v52 = vmul.f32 %v4404_v50, %v1868_v37 }
 0x9c9   :  { %v4406_v53 = vpop.eup %4405 }
 0x9ca   :  { %v1883_v54 = vmul.f32 %v4406_v53, %v1867_v39  ;;  %v1892_v55 = vmul.f32 %v3885_v51, %v1884_v52 }
 0x9cc   :  { %v1891_v57 = vmul.f32 %v3885_v51, %v1883_v54  ;;  %v4925_v59 = vadd.f32 %v3886_v56, %v1892_v55 }
 0x9ce   :  { %v4923_v58 = vadd.f32 %v3886_v56, %v1891_v57 }
 0x9d0   :  { %4218 = vmatprep.mubr.msk.f32.mxu1 %vm92_vm0, %v4923_v58 }
 0x9d1   :  { %4219 = vmatmul.mubr.msk.f32.vlgmr.msra.gmra.mxu1 %vm92_vm0, %v4925_v59 }
 0x9d2   :  { %4223 = vmatprep.mubr.msk.f32.mxu1 %vm4520_vm1, %v4517_v7 }
 0xa91   :  { %v4220_v61 = vpop.f32.mrf.mxu1 }
 0xa92   :  { %v4936_v62 = vadd.f32 %v4220_v61, %v3892_v60 }
 0xa93   :  { %v1986_v63 = vpop.f32.mrf.mxu1 }
 0xa94   :  { %v4938_v0 = vadd.f32 %v3892_v60, %v1986_v63  ;;  %1999 = vrot.lane.b32.xlu0 %v4936_v62, %s4519_s25 }
 0xa96   :  { %1997 = vrot.lane.b32.xlu1 %v4938_v0, %s4519_s25 }
 0xa98   :  { %2005 = vrot.lane.b32.xlu0 %v4938_v0, %s4521_s26 }
 0xa9a   :  { %2001 = vrot.lane.b32.xlu1 %v4938_v0, %s4518_s24 }
 0xa9c   :  { %2009 = vrot.lane.b32.xlu0 %v4938_v0, %s4522_s27 }
 0xa9e   :  { %2003 = vrot.lane.b32.xlu1 %v4936_v62, %s4518_s24 }
 0xaa2   :  { %2007 = vrot.lane.b32.xlu1 %v4936_v62, %s4521_s26 }
 0xaa6   :  { %2085 = vrot.lane.b32.xlu1 %v4936_v62, %s4522_s27 }
 0xb06   :  { %v4956_v1 = vpop.permute.xlu0 %1999 }
 0xb07   :  { %2237 = vrot.lane.b32.xlu1 %v4956_v1, %s4522_s27 }
 0xb08   :  { %v4960_v3 = vpop.permute.xlu1 %1997 }
 0xb09   :  { %2161 = vrot.lane.b32.xlu0 %v4960_v3, %s4522_s27 }
 0xb0a   :  { %v4964_v4 = vpop.permute.xlu0 %2005 }
 0xb0c   :  { %v4966_v6 = vpop.permute.xlu1 %2001 }
 0xb0d   :  { %2313 = vrot.lane.b32.xlu0 %v4966_v6, %s4522_s27 }
 0xb0e   :  { %v2010_v8 = vpop.permute.xlu0 %2009 }
 0xb0f   :  { %4222 = vmatpush3.xpose.msk.msra.mxu1 %vm190_vm2, %v2010_v8 }
 0xb10   :  { %v4971_v9 = vpop.permute.xlu1 %2003  ;;  %4226 = vmatprep.subr.mxu1 %v4517_v7 }
 0xb11   :  { %2465 = vrot.lane.b32.xlu0 %v4964_v4, %s4522_s27  ;;  %2389 = vrot.lane.b32.xlu1 %v4971_v9, %s4522_s27 }
 0xb12   :  { %4224 = vmatmul.mubr.msk.f32.vlgmr.msra.gmra.mxu1 %vm190_vm2, %v4938_v0 }
 0xb13   :  { %4228 = vmatprep.mubr.msk.f32.mxu1 %vm4520_vm1, %v4517_v7 }
 0xb14   :  { %v4982_v10 = vpop.permute.xlu1 %2007 }
 0xb15   :  { %2541 = vrot.lane.b32.xlu1 %v4982_v10, %s4522_s27 }
 0xb18   :  { %v2086_v11 = vpop.permute.xlu1 %2085 }
 0xb19   :  { %4227 = vmatpush3.xpose.msk.msra.mxu1 %vm190_vm2, %v2086_v11 }
 0xb1a   :  { %4236 = vmatprep.subr.mxu1 %v4517_v7 }
 0xb1c   :  { %4229 = vmatmul.mubr.msk.f32.vlgmr.msra.gmra.mxu1 %vm190_vm2, %v4936_v62 }
 0xb1d   :  { %4238 = vmatprep.mubr.msk.f32.mxu1 %vm4520_vm1, %v4517_v7 }
 0xb79   :  { %v2238_v12 = vpop.permute.xlu1 %2237 }
 0xb7a   :  { %4237 = vmatpush3.xpose.msk.msra.mxu1 %vm190_vm2, %v2238_v12 }
 0xb7b   :  { %v2162_v13 = vpop.permute.xlu0 %2161  ;;  %4246 = vmatprep.subr.mxu1 %v4517_v7 }
 0xb7c   :  { %4232 = vmatpush3.xpose.msk.msra.mxu0 %vm190_vm2, %v2162_v13 }
 0xb7d   :  { %4239 = vmatmul.mubr.msk.f32.vlgmr.msra.gmra.mxu1 %vm190_vm2, %v4956_v1  ;;  %4241 = vmatprep.subr.mxu0 %v4517_v7 }
 0xb7e   :  { %4248 = vmatprep.mubr.msk.f32.mxu1 %vm4520_vm1, %v4517_v7 }
 0xb7f   :  { %4234 = vmatmul.mubr.msk.f32.vlgmr.msra.gmra.mxu0 %vm190_vm2, %v4960_v3  ;;  %v2314_v14 = vpop.permute.xlu0 %2313 }
 0xb80   :  { %4242 = vmatpush3.xpose.msk.msra.mxu0 %vm190_vm2, %v2314_v14  ;;  %4243 = vmatprep.mubr.msk.f32.mxu0 %vm4520_vm1, %v4517_v7 }
 0xb81   :  { %4251 = vmatprep.subr.mxu0 %v4517_v7 }
 0xb83   :  { %4244 = vmatmul.mubr.msk.f32.vlgmr.msra.gmra.mxu0 %vm190_vm2, %v4966_v6  ;;  %v2466_v15 = vpop.permute.xlu0 %2465  ;;  %v2390_v18 = vpop.permute.xlu1 %2389 }
 0xb84   :  { %4247 = vmatpush3.xpose.msk.msra.mxu1 %vm190_vm2, %v2390_v18  ;;  %4252 = vmatpush3.xpose.msk.msra.mxu0 %vm190_vm2, %v2466_v15 }
 0xb85   :  { %4253 = vmatprep.mubr.msk.f32.mxu0 %vm4520_vm1, %v4517_v7  ;;  %4256 = vmatprep.subr.mxu1 %v4517_v7 }
 0xb86   :  { %4261 = vmatprep.subr.mxu0 %v4517_v7 }
 0xb87   :  { %4249 = vmatmul.mubr.msk.f32.vlgmr.msra.gmra.mxu1 %vm190_vm2, %v4971_v9  ;;  %4254 = vmatmul.mubr.msk.f32.vlgmr.msra.gmra.mxu0 %vm190_vm2, %v4964_v4  ;;  %v2542_v19 = vpop.permute.xlu1 %2541 }
 0xb88   :  { %4257 = vmatpush3.xpose.msk.msra.mxu1 %vm190_vm2, %v2542_v19  ;;  %4258 = vmatprep.mubr.msk.f32.mxu1 %vm4520_vm1, %v4517_v7 }
 0xb89   :  { %4266 = vmatprep.subr.mxu1 %v4517_v7  ;;  %4263 = vmatprep.mubr.msk.f32.mxu0 %vm4520_vm1, %v4517_v7 }
 0xb8b   :  { %4259 = vmatmul.mubr.msk.f32.vlgmr.msra.gmra.mxu1 %vm190_vm2, %v4982_v10 }
 0xb8c   :  { %4268 = vmatprep.mubr.msk.f32.mxu1 %vm4520_vm1, %v4517_v7 }
 0xbd2   :  { %v2081_v20 = vpop.f32.mrf.mxu1 }
 0xbd3   :  { %v2617_v21 = vsel %vm190_vm2, %v2081_v20, -inf }
 0xbd4   :  { %v4225_v22 = vpop.f32.mrf.mxu1  ;;  %2618 = vmax.xlane.f32.xlu0 %v2617_v21 }
 0xbdc   :  { %v2157_v23 = vpop.f32.mrf.mxu1 }
 0xbdd   :  { %v2620_v24 = vsel %vm190_vm2, %v2157_v23, -inf }
 0xbde   :  { %2621 = vmax.xlane.f32.xlu1 %v2620_v24  ;;  %v4230_v25 = vpop.f32.mrf.mxu1 }
 0xc3d   :  { %v2309_v26 = vpop.f32.mrf.mxu1 }
 0xc3e   :  { %v2626_v33 = vsel %vm190_vm2, %v2309_v26, -inf }
 0xc3f   :  { %v2233_v27 = vpop.f32.mrf.mxu0  ;;  %v4240_v28 = vpop.f32.mrf.mxu1 }
 0xc40   :  { %v2623_v29 = vsel %vm190_vm2, %v2233_v27, -inf }
 0xc41   :  { %v4235_v30 = vpop.f32.mrf.mxu0  ;;  %2624 = vmax.xlane.f32.xlu0 %v2623_v29 }
 0xc43   :  { %v2385_v31 = vpop.f32.mrf.mxu0 }
 0xc44   :  { %v2629_v32 = vsel %vm190_vm2, %v2385_v31, -inf }
 0xc45   :  { %v4245_v34 = vpop.f32.mrf.mxu0  ;;  %2630 = vmax.xlane.f32.xlu1 %v2629_v32  ;;  %2627 = vmax.xlane.f32.xlu0 %v2626_v33 }
 0xc47   :  { %v2461_v35 = vpop.f32.mrf.mxu1  ;;  %v2537_v36 = vpop.f32.mrf.mxu0 }
 0xc48   :  { %v2635_v37 = vsel %vm190_vm2, %v2537_v36, -inf  ;;  %v2632_v38 = vsel %vm190_vm2, %v2461_v35, -inf }
 0xc49   :  { %v4255_v39 = vpop.f32.mrf.mxu0  ;;  %2636 = vmax.xlane.f32.xlu1 %v2635_v37  ;;  %2633 = vmax.xlane.f32.xlu0 %v2632_v38  ;;  %v4250_v40 = vpop.f32.mrf.mxu1 }
 0xc4b   :  { %v2613_v41 = vpop.f32.mrf.mxu1 }
 0xc4c   :  { %v2638_v16 = vsel %vm190_vm2, %v2613_v41, -inf }
 0xc4d   :  { %2639 = vmax.xlane.f32.xlu0 %v2638_v16  ;;  %v4260_v17 = vpop.f32.mrf.mxu1 }
 0xc5a   :  { %2705 = vrot.lane.b32.xlu1 %v4938_v0, %s4523_s28 }
 0xc5d   :  { %v2619_v44 = vpop.xlane.xlu0 %2618 }
 0xc5e   :  { %2857 = vrot.lane.b32.xlu1 %v4960_v3, %s4523_s28  ;;  %v2641_v45 = vsub.f32 %v2081_v20, %v2619_v44 }
 0xc60   :  { %v2649_v47 = vmul.f32 1.442695, %v2641_v45 }
 0xc62   :  { %2933 = vrot.lane.b32.xlu1 %v4956_v1, %s4523_s28 }
 0xc63   :  { %2781 = vrot.lane.b32.xlu0 %v4936_v62, %s4523_s28 }
 0xc66   :  { %3085 = vrot.lane.b32.xlu1 %v4971_v9, %s4523_s28 }
 0xc67   :  { %3009 = vrot.lane.b32.xlu0 %v4966_v6, %s4523_s28  ;;  %v2622_v42 = vpop.xlane.xlu1 %2621 }
 0xc68   :  { %v2642_v43 = vsub.f32 %v2157_v23, %v2622_v42 }
 0xc6a   :  { %v2651_v46 = vmul.f32 1.442695, %v2642_v43 }
 0xc6c   :  { %4407 = vpow2.f32 %v2651_v46 }
 0xc6d   :  { %4409 = vpow2.f32 %v2649_v47 }
 0xc79   :  { %v5048_v48 = vpop.eup %4407 }
 0xc7a   :  { %v2668_v49 = vsel %vm190_vm2, %v5048_v48, 0.0  ;;  %v5052_v5 = vpop.eup %4409 }
 0xc7b   :  { %v2665_v2 = vsel %vm190_vm2, %v5052_v5, 0.0 }
 0xc86   :  { %2669 = vadd.xlane.f32.xlu0 %v2668_v49 }
 0xc8a   :  { %2666 = vadd.xlane.f32.xlu1 %v2665_v2 }
 0xcca   :  { %v2625_v50 = vpop.xlane.xlu0 %2624 }
 0xccb   :  { %v2643_v51 = vsub.f32 %v2233_v27, %v2625_v50 }
 0xccd   :  { %v2653_v52 = vmul.f32 1.442695, %v2643_v51 }
 0xcce   :  { %v2628_v53 = vpop.xlane.xlu0 %2627  ;;  %v2631_v54 = vpop.xlane.xlu1 %2630 }
 0xccf   :  { %4411 = vpow2.f32 %v2653_v52  ;;  %v2644_v55 = vsub.f32 %v2309_v26, %v2628_v53  ;;  %v2645_v56 = vsub.f32 %v2385_v31, %v2631_v54 }
 0xcd1   :  { %v2655_v57 = vmul.f32 1.442695, %v2644_v55  ;;  %v2657_v60 = vmul.f32 1.442695, %v2645_v56  ;;  %v3922_v55 = vld [vmem:[%s5231_s3 + $0x38] sm:$0xff]  ;;  %v3921_v56 = vld [vmem:[%s5231_s3 + $0x30] sm:$0xff] }
 0xcd2   :  { %v2634_v61 = vpop.xlane.xlu0 %2633  ;;  %v2637_v62 = vpop.xlane.xlu1 %2636 }
 0xcd3   :  { %4413 = vpow2.f32 %v2655_v57  ;;  %v2646_v63 = vsub.f32 %v2461_v35, %v2634_v61  ;;  %v2647_v0 = vsub.f32 %v2537_v36, %v2637_v62  ;;  %v3920_v57 = vld [vmem:[%s5231_s3 + $0x28] sm:$0xff] }
 0xcd4   :  { %4415 = vpow2.f32 %v2657_v60  ;;  %v3919_v60 = vld [vmem:[%s5231_s3 + $0x20] sm:$0xff] }
 0xcd5   :  { %v2659_v1 = vmul.f32 1.442695, %v2646_v63  ;;  %v2661_v3 = vmul.f32 1.442695, %v2647_v0 }
 0xcd6   :  { %v2640_v6 = vpop.xlane.xlu0 %2639  ;;  %v2706_v8 = vpop.permute.xlu1 %2705 }
 0xcd7   :  { %4417 = vpow2.f32 %v2659_v1  ;;  %v2648_v9 = vsub.f32 %v2613_v41, %v2640_v6  ;;  %4262 = vmatpush3.msra.mxu0 %v2706_v8 }
 0xcd8   :  { %4419 = vpow2.f32 %v2661_v3  ;;  %4271 = vmatprep.subr.mxu0 %v4517_v7 }
 0xcd9   :  { %v2663_v11 = vmul.f32 1.442695, %v2648_v9 }
 0xcda   :  { %v2782_v12 = vpop.permute.xlu0 %2781  ;;  %v2858_v27 = vpop.permute.xlu1 %2857 }
 0xcdb   :  { %4421 = vpow2.f32 %v2663_v11  ;;  %4267 = vmatpush3.msra.mxu1 %v2782_v12 }
 0xcdc   :  { %v4412_v13 = vpop.eup %4411  ;;  %4276 = vmatprep.subr.mxu1 %v4517_v7 }
 0xcdd   :  { %v2671_v14 = vsel %vm190_vm2, %v4412_v13, 0.0 }
 0xcde   :  { %2672 = vadd.xlane.f32.xlu1 %v2671_v14  ;;  %v2934_v28 = vpop.permute.xlu1 %2933  ;;  %v3010_v29 = vpop.permute.xlu0 %3009 }
 0xce0   :  { %v4414_v15 = vpop.eup %4413 }
 0xce1   :  { %v4416_v18 = vpop.eup %4415  ;;  %v2674_v19 = vsel %vm190_vm2, %v4414_v15, 0.0 }
 0xce2   :  { %2675 = vadd.xlane.f32.xlu0 %v2674_v19  ;;  %v2677_v20 = vsel %vm190_vm2, %v4416_v18, 0.0  ;;  %v3086_v30 = vpop.permute.xlu1 %3085 }
 0xce3   :  { %2678 = vadd.xlane.f32.xlu1 %v2677_v20 }
 0xce4   :  { %v4418_v21 = vpop.eup %4417 }
 0xce5   :  { %v5061_v22 = vpop.eup %4419  ;;  %v2680_v23 = vsel %vm190_vm2, %v4418_v21, 0.0 }
 0xce6   :  { %2681 = vadd.xlane.f32.xlu0 %v2680_v23  ;;  %v2683_v24 = vsel %vm190_vm2, %v5061_v22, 0.0 }
 0xce7   :  { %2684 = vadd.xlane.f32.xlu1 %v2683_v24 }
 0xce8   :  { %v5066_v25 = vpop.eup %4421 }
 0xce9   :  { %v2686_v26 = vsel %vm190_vm2, %v5066_v25, 0.0 }
 0xcea   :  { %2687 = vadd.xlane.f32.xlu0 %v2686_v26 }
 0xcf8   :  { %3237 = vrot.lane.b32.xlu1 %v4982_v10, %s4523_s28 }
 0xd00   :  { %3161 = vrot.lane.b32.xlu0 %v4964_v4, %s4523_s28 }
 0xd0f   :  { %v2670_v31 = vpop.xlane.xlu0 %2669 }
 0xd10   :  { %4423 = vrcp.f32 %v2670_v31 }
 0xd13   :  { %v2667_v32 = vpop.xlane.xlu1 %2666 }
 0xd14   :  { %4425 = vrcp.f32 %v2667_v32 }
 0xd1d   :  { %v4424_v33 = vpop.eup %4423 }
 0xd1e   :  { %v2698_v34 = vmul.f32 %v4424_v33, %v5048_v48 }
 0xd20   :  { %4269 = vmatmul.mubr.msk.f32.vlgmr.msra.gmra.mxu1 %vm190_vm2, %v2698_v34 }
 0xd21   :  { %v4426_v35 = vpop.eup %4425  ;;  %4277 = vmatpush3.msra.mxu1 %v2934_v28  ;;  %4278 = vmatprep.mubr.msk.f32.mxu1 %vm4520_vm1, %v4517_v7  ;;  %v3924_v28 = vld [vmem:[%s5232_s4 + $0x1] ss:$0 sm:$0xff] }
 0xd22   :  { %v2697_v4 = vmul.f32 %v4426_v35, %v5052_v5  ;;  %4286 = vmatprep.subr.mxu1 %v4517_v7 }
 0xd24   :  { %4264 = vmatmul.mubr.msk.f32.vlgmr.msra.gmra.mxu0 %vm190_vm2, %v2697_v4 }
 0xd25   :  { %4272 = vmatpush3.msra.mxu0 %v2858_v27  ;;  %4273 = vmatprep.mubr.msk.f32.mxu0 %vm4520_vm1, %v4517_v7 }
 0xd26   :  { %4281 = vmatprep.subr.mxu0 %v4517_v7 }
 0xd67   :  { %v2673_v10 = vpop.xlane.xlu1 %2672 }
 0xd68   :  { %4427 = vrcp.f32 %v2673_v10 }
 0xd6b   :  { %v2676_v36 = vpop.xlane.xlu0 %2675 }
 0xd6c   :  { %4429 = vrcp.f32 %v2676_v36  ;;  %v2679_v37 = vpop.xlane.xlu1 %2678 }
 0xd6d   :  { %4431 = vrcp.f32 %v2679_v37 }
 0xd6f   :  { %v2682_v38 = vpop.xlane.xlu0 %2681 }
 0xd70   :  { %4433 = vrcp.f32 %v2682_v38  ;;  %v2685_v39 = vpop.xlane.xlu1 %2684 }
 0xd71   :  { %4435 = vrcp.f32 %v2685_v39 }
 0xd73   :  { %v2688_v40 = vpop.xlane.xlu0 %2687 }
 0xd74   :  { %4437 = vrcp.f32 %v2688_v40  ;;  %v3238_v5 = vpop.permute.xlu1 %3237 }
 0xd75   :  { %v4428_v41 = vpop.eup %4427 }
 0xd76   :  { %v2699_v16 = vmul.f32 %v4428_v41, %v4412_v13 }
 0xd77   :  { %v3162_v46 = vpop.permute.xlu0 %3161 }
 0xd78   :  { %4274 = vmatmul.mubr.msk.f32.vlgmr.msra.gmra.mxu0 %vm190_vm2, %v2699_v16 }
 0xd79   :  { %v4430_v17 = vpop.eup %4429  ;;  %4282 = vmatpush3.msra.mxu0 %v3010_v29  ;;  %4283 = vmatprep.mubr.msk.f32.mxu0 %vm4520_vm1, %v4517_v7 }
 0xd7a   :  { %v4432_v42 = vpop.eup %4431  ;;  %4291 = vmatprep.subr.mxu0 %v4517_v7  ;;  %v2700_v43 = vmul.f32 %v4430_v17, %v4414_v15 }
 0xd7b   :  { %v2701_v44 = vmul.f32 %v4432_v42, %v4416_v18  ;;  %v3933_v42 = vld [vmem:[%s5235_s7 + $0x30] sm:$0xff] }
 0xd7c   :  { %4279 = vmatmul.mubr.msk.f32.vlgmr.msra.gmra.mxu1 %vm190_vm2, %v2700_v43  ;;  %v3932_v43 = vld [vmem:[%s5235_s7 + $0x28] sm:$0xff] }
 0xd7d   :  { %v4434_v45 = vpop.eup %4433  ;;  %4284 = vmatmul.mubr.msk.f32.vlgmr.msra.gmra.mxu0 %vm190_vm2, %v2701_v44  ;;  %4287 = vmatpush3.msra.mxu1 %v3086_v30  ;;  %v3931_v44 = vld [vmem:[%s5235_s7 + $0x20] sm:$0xff] }
 0xd7e   :  { %v4436_v47 = vpop.eup %4435  ;;  %4292 = vmatpush3.msra.mxu0 %v3162_v46  ;;  %4288 = vmatprep.mubr.msk.f32.mxu1 %vm4520_vm1, %v4517_v7  ;;  %v2702_v48 = vmul.f32 %v4434_v45, %v4418_v21  ;;  %v3945_v45 = vld [vmem:[%s5237_s9 + $0x78] sm:$0xff]  ;;  %v3944_v46 = vld [vmem:[%s5237_s9 + $0x70] sm:$0xff] }
 0xd7f   :  { %4293 = vmatprep.mubr.msk.f32.mxu0 %vm4520_vm1, %v4517_v7  ;;  %4296 = vmatprep.subr.mxu1 %v4517_v7  ;;  %v2703_v49 = vmul.f32 %v4436_v47, %v5061_v22  ;;  %v3943_v47 = vld [vmem:[%s5237_s9 + $0x68] sm:$0xff] }
 0xd80   :  { %4289 = vmatmul.mubr.msk.f32.vlgmr.msra.gmra.mxu1 %vm190_vm2, %v2702_v48  ;;  %4301 = vmatprep.subr.mxu0 %v3922_v55  ;;  %v3942_v48 = vld [vmem:[%s5237_s9 + $0x60] sm:$0xff] }
 0xd81   :  { %v4438_v2 = vpop.eup %4437  ;;  %4294 = vmatmul.mubr.msk.f32.vlgmr.msra.gmra.mxu0 %vm190_vm2, %v2703_v49  ;;  %4297 = vmatpush3.msra.mxu1 %v3238_v5  ;;  %v3941_v49 = vld [vmem:[%s5237_s9 + $0x58] sm:$0xff] }
 0xd82   :  { %4298 = vmatprep.mubr.msk.f32.mxu1 %vm4520_vm1, %v4517_v7  ;;  %v2704_v50 = vmul.f32 %v4438_v2, %v5066_v25  ;;  %4312 = vmatprep.subr.mxu1 %v4517_v7 }
 0xd83   :  { %4302 = vmatpush3.msra.mxu0 %v3922_v55  ;;  %v3929_v55 = vld [vmem:[%s5233_s5 + $0x1] ss:$0 sm:$0xff] }
 0xd84   :  { %4299 = vmatmul.mubr.msk.f32.vlgmr.msra.gmra.mxu1 %vm190_vm2, %v2704_v50  ;;  %4303 = vmatprep.subr.mxu0 %v3921_v56 }
 0xd85   :  { %4320 = vmatprep.mubr.msk.f32.mxu1 %vm4520_vm1, %v4517_v7  ;;  %4304 = vmatpush3.msra.mxu0 %v3921_v56 }
 0xd86   :  { %4305 = vmatprep.subr.mxu0 %v3920_v57 }
 0xd87   :  { %4306 = vmatpush3.msra.mxu0 %v3920_v57 }
 0xd88   :  { %4307 = vmatprep.subr.mxu0 %v3919_v60 }
 0xd89   :  { %4308 = vmatpush3.msra.mxu0 %v3919_v60 }
 0xd8a   :  { %4323 = vmatprep.subr.mxu0 %v4517_v7 }
 0xde0   :  { %v2853_v51 = vpop.f32.mrf.mxu1 }
 0xde2   :  { %v4270_v52 = vpop.f32.mrf.mxu1 }
 0xde4   :  { %v2777_v53 = vpop.f32.mrf.mxu0 }
 0xde6   :  { %v4265_v54 = vpop.f32.mrf.mxu0 }
 0xe38   :  { %v2929_v61 = vpop.f32.mrf.mxu0 }
 0xe39   :  { %3315 = vrot.lane.b32.xlu0 %v2929_v61, %s4515_s22  ;;  %v3930_v61 = vld [vmem:[%s5234_s6 + $0x1] ss:$0 sm:$0xff] }
 0xe3a   :  { %v4275_v62 = vpop.f32.mrf.mxu0 }
 0xe3c   :  { %v3005_v63 = vpop.f32.mrf.mxu1 }
 0xe3d   :  { %v3081_v0 = vpop.f32.mrf.mxu0  ;;  %3317 = vrot.lane.b32.xlu1 %v3005_v63, %s4515_s22 }
 0xe3e   :  { %3323 = vrot.lane.b32.xlu0 %v3081_v0, %s4524_s20  ;;  %v4280_v1 = vpop.f32.mrf.mxu1 }
 0xe3f   :  { %v4285_v3 = vpop.f32.mrf.mxu0 }
 0xe40   :  { %v3157_v6 = vpop.f32.mrf.mxu1 }
 0xe41   :  { %v3233_v8 = vpop.f32.mrf.mxu0  ;;  %3325 = vrot.lane.b32.xlu1 %v3157_v6, %s4524_s20 }
 0xe42   :  { %3331 = vrot.lane.b32.xlu0 %v3233_v8, %s4525_s21  ;;  %v4290_v9 = vpop.f32.mrf.mxu1 }
 0xe43   :  { %v4295_v11 = vpop.f32.mrf.mxu0  ;;  %v3940_v9 = vld [vmem:[%s5237_s9 + $0x50] sm:$0xff] }
 0xe44   :  { %v3309_v12 = vpop.f32.mrf.mxu1  ;;  %v3939_v11 = vld [vmem:[%s5237_s9 + $0x48] sm:$0xff] }
 0xe45   :  { %3333 = vrot.lane.b32.xlu1 %v3309_v12, %s4525_s21  ;;  %v3938_v12 = vld [vmem:[%s5237_s9 + $0x40] sm:$0xff] }
 0xe46   :  { %v4300_v13 = vpop.f32.mrf.mxu1 }
 0xe47   :  { %v3936_v13 = vld [vmem:[%s5236_s8 + $0x1] ss:$0 sm:$0xff] }
 0xeab   :  { %v3316_v14 = vpop.permute.xlu0 %3315 }
 0xeac   :  { %v3337_v19 = vsel %vm190_vm2, %v2777_v53, %v3316_v14 }
 0xeaf   :  { %v3318_v15 = vpop.permute.xlu1 %3317 }
 0xeb0   :  { %v3324_v18 = vpop.permute.xlu0 %3323  ;;  %v3338_v24 = vsel %vm190_vm2, %v2853_v51, %v3318_v15 }
 0xeb1   :  { %v3339_v21 = vsel %vm1519_vm3, %v3337_v19, %v3324_v18 }
 0xeb3   :  { %v3326_v20 = vpop.permute.xlu1 %3325 }
 0xeb4   :  { %v3332_v22 = vpop.permute.xlu0 %3331  ;;  %v3340_v25 = vsel %vm1519_vm3, %v3338_v24, %v3326_v20  ;;  %v3947_v20 = vld [vmem:[%s5238_s10 + $0x1] ss:$0 sm:$0xff] }
 0xeb5   :  { %v3341_v23 = vsel %vm1522_vm4, %v3339_v21, %v3332_v22 }
 0xeb6   :  { %4309 = vmatprep.mubr.msk.f32.mxu0 %vm92_vm0, %v3341_v23 }
 0xeb7   :  { %v3334_v26 = vpop.permute.xlu1 %3333 }
 0xeb8   :  { %v3342_v27 = vsel %vm1522_vm4, %v3340_v25, %v3334_v26 }
 0xeb9   :  { %4310 = vmatmul.mubr.msk.f32.vlgmr.msra.gmra.mxu0 %vm92_vm0, %v3342_v27 }
 0xeba   :  { %4339 = vmatprep.mubr.msk.f32.mxu0 %vm4520_vm1, %v4517_v7  ;;  %4324 = vmatpush3.msra.mxu0 %v3945_v45 }
 0xebb   :  { %4325 = vmatprep.subr.mxu0 %v4517_v7 }
 0xebc   :  { %4326 = vmatpush3.msra.mxu0 %v3944_v46 }
 0xebd   :  { %4327 = vmatprep.subr.mxu0 %v4517_v7 }
 0xebe   :  { %4328 = vmatpush3.msra.mxu0 %v3943_v47 }
 0xebf   :  { %4329 = vmatprep.subr.mxu0 %v4517_v7 }
 0xec0   :  { %4330 = vmatpush3.msra.mxu0 %v3942_v48 }
 0xec1   :  { %4331 = vmatprep.subr.mxu0 %v4517_v7 }
 0xec2   :  { %4332 = vmatpush3.msra.mxu0 %v3941_v49  ;;  %v3951_v49 = vld [vmem:[%s5239_s11 + $0x1] ss:$0 sm:$0xff]  ;;  %s4526_s11 = smov [#allocation7]  }
 0xec3   :  { %4333 = vmatprep.subr.mxu0 %v4517_v7  ;;  %s3837_s2 = sshll.u32 %s4526_s11, 4  ;;  %s3838_s2 = int_to_ptr.vmem [resolvable:$true] %s3837_s2 }
 0xec4   :  { %4334 = vmatpush3.msra.mxu0 %v3940_v9  ;;  %p4492_p11 = scmp.lt.s32.totalorder %s3838_s2, %s3838_s2 }
 0xec5   :  { %4335 = vmatprep.subr.mxu0 %v4517_v7 }
 0xec6   :  { %4336 = vmatpush3.msra.mxu0 %v3939_v11 }
 0xec7   :  { %4337 = vmatprep.subr.mxu0 %v4517_v7 }
 0xec8   :  { %4338 = vmatpush3.msra.mxu0 %v3938_v12 }
 0xf79   :  { %v4311_v29 = vpop.f32.mrf.mxu0 }
 0xf7a   :  { %v3434_v30 = vadd.f32 %v4311_v29, %v3924_v28 }
 0xf7b   :  { %v3428_v31 = vpop.f32.mrf.mxu0 }
 0xf7c   :  { %v3429_v32 = vadd.f32 %v3924_v28, %v3428_v31  ;;  %v3438_v33 = vadd.f32 %v3434_v30, %v4925_v59 }
 0xf7e   :  { %v3446_v34 = vsel %vm92_vm0, %v3438_v33, 0.0  ;;  %v3437_v35 = vadd.f32 %v3429_v32, %v4923_v58  ;;  %v3934_v58 = vld [vmem:[%s5235_s7 + $0x38] sm:$0xff] }
 0xf7f   :  { %3447 = vadd.xlane.f32.xlu1 %v3446_v34  ;;  %4313 = vmatpush3.msra.mxu1 %v3934_v58 }
 0xf80   :  { %v3443_v4 = vsel %vm92_vm0, %v3437_v35, 0.0  ;;  %4314 = vmatprep.subr.mxu1 %v4517_v7 }
 0xf81   :  { %3444 = vadd.xlane.f32.xlu0 %v3443_v4  ;;  %4315 = vmatpush3.msra.mxu1 %v3933_v42 }
 0xf82   :  { %4316 = vmatprep.subr.mxu1 %v4517_v7 }
 0xf83   :  { %4317 = vmatpush3.msra.mxu1 %v3932_v43 }
 0xf84   :  { %4318 = vmatprep.subr.mxu1 %v4517_v7 }
 0xf85   :  { %4319 = vmatpush3.msra.mxu1 %v3931_v44 }
 0xf86   :  { %4342 = vmatprep.subr.mxu1 %v4517_v7 }
0x1008   :  { %v3448_v10 = vpop.xlane.xlu1 %3447 }
0x1009   :  { %v3450_v36 = vmul.f32 0.03125, %v3448_v10 }
0x100a   :  { %v3445_v37 = vpop.xlane.xlu0 %3444 }
0x100b   :  { %v3449_v38 = vmul.f32 0.03125, %v3445_v37  ;;  %v3452_v39 = vsub.f32 %v3438_v33, %v3450_v36 }
0x100d   :  { %v3451_v40 = vsub.f32 %v3437_v35, %v3449_v38  ;;  %v3454_v17 = vmul.f32 %v3452_v39, %v3452_v39 }
0x100f   :  { %v3453_v41 = vmul.f32 %v3451_v40, %v3451_v40  ;;  %v3458_v59 = vsel %vm92_vm0, %v3454_v17, 0.0  ;;  %v3743_v17 = vld [vmem:[#allocation5 + $0x8] sm:$0xff] }
0x1011   :  { %v3455_v16 = vsel %vm92_vm0, %v3453_v41, 0.0  ;;  %v3745_v41 = vld [vmem:[#allocation5 + $0x18] sm:$0xff] }
0x1012   :  { %3456 = vadd.xlane.f32.xlu0 %v3455_v16  ;;  %v3744_v16 = vld [vmem:[#allocation5 + $0x10] sm:$0xff] }
0x1016   :  { %3459 = vadd.xlane.f32.xlu0 %v3458_v59  ;;  %v3742_v59 = vld [vmem:[#allocation5] sm:$0xff] }
0x109b   :  { %v3457_v5 = vpop.xlane.xlu0 %3456 }
0x109c   :  { %v3461_v2 = vmul.f32 0.03125, %v3457_v5 }
0x109e   :  { %v3463_v50 = vadd.f32 1e-05, %v3461_v2 }
0x109f   :  { %v3460_v51 = vpop.xlane.xlu0 %3459 }
0x10a0   :  { %4439 = vrsqrt.f32 %v3463_v50  ;;  %v3462_v52 = vmul.f32 0.03125, %v3460_v51 }
0x10a2   :  { %v3464_v53 = vadd.f32 1e-05, %v3462_v52 }
0x10a4   :  { %4441 = vrsqrt.f32 %v3464_v53 }
0x10ad   :  { %v4440_v54 = vpop.eup %4439 }
0x10ae   :  { %v3467_v56 = vmul.f32 %v4440_v54, %v3451_v40 }
0x10b0   :  { %v3475_v57 = vmul.f32 %v3929_v55, %v3467_v56 }
0x10b1   :  { %v4442_v60 = vpop.eup %4441 }
0x10b2   :  { %v3468_v62 = vmul.f32 %v4442_v60, %v3452_v39  ;;  %v3483_v0 = vadd.f32 %v3930_v61, %v3475_v57  ;;  %v3953_v60 = vld [vmem:[%s5242_s14] ss:$0 sm:$0xff] }
0x10b4   :  { %v3476_v63 = vmul.f32 %v3929_v55, %v3468_v62  ;;  %v3500_v3 = vrot.slane %v3483_v0, 7 }
0x10b6   :  { %v3484_v1 = vadd.f32 %v3930_v61, %v3476_v63 }
0x10b8   :  { %v3501_v6 = vrot.slane %v3484_v1, 6 }
0x10ba   :  { %v3503_v8 = vsel %vm3502_vm6, %v3501_v6, %v3500_v3 }
0x10bb   :  { %4321 = vmatmul.mubr.msk.f32.vlgmr.msra.gmra.mxu1 %vm92_vm0, %v3503_v8 }
0x10bc   :  { %4350 = vmatprep.mubr.msk.f32.mxu1 %vm4520_vm1, %v4517_v7  ;;  %4343 = vmatpush3.msra.mxu1 %v3745_v41 }
0x10bd   :  { %4344 = vmatprep.subr.mxu1 %v4517_v7 }
0x10be   :  { %4345 = vmatpush3.msra.mxu1 %v3744_v16 }
0x10bf   :  { %4346 = vmatprep.subr.mxu1 %v4517_v7 }
0x10c0   :  { %4347 = vmatpush3.msra.mxu1 %v3743_v17 }
0x10c1   :  { %4348 = vmatprep.subr.mxu1 %v4517_v7  ;;  %v3952_v7 = vld [vmem:[%s5240_s12 + $0x1] ss:$0 sm:$0xff]  ;;  %s4487_s12 = scalar_lea.vmem %s3838_s2, 32 }
0x10c2   :  { %4349 = vmatpush3.msra.mxu1 %v3742_v59  ;;  %p4488_p10 = scmp.ne.s32.totalorder %s3838_s2, %s4487_s12  ;;  %p4493_p12 = scmp.lt.s32.totalorder %s4487_s12, %s4487_s12 }
0x10c4   :  { %p4494_p13 = por %p4493_p12, %p4492_p11 }
0x10c6   :  { %p4495_p0 = pnand %p4494_p13, %p4488_p10 }
0x117b   :  { %v3572_v14 = vpop.f32.mrf.mxu1 }
0x117c   :  { %v3573_v15 = vadd.f32 %v3936_v13, %v3572_v14 }
0x117d   :  { %v4322_v18 = vpop.f32.mrf.mxu1 }
0x117e   :  { %v3576_v19 = vmax.f32 %v3573_v15, 0.0 }
0x1180   :  { %4340 = vmatmul.mubr.msk.f32.vlgmr.msra.gmra.mxu0 %vm1773_vm5, %v3576_v19 }
0x1240   :  { %v3663_v21 = vpop.f32.mrf.mxu0 }
0x1241   :  { %v3664_v22 = vadd.f32 %v3947_v20, %v3663_v21 }
0x1242   :  { %v4341_v23 = vpop.f32.mrf.mxu0 }
0x1243   :  { %v3668_v24 = vrot.slane %v3664_v22, 1  ;;  %v3669_v25 = vrot.slane %v3664_v22, 2 }
0x1245   :  { %v3673_v26 = vadd.f32 %v3669_v25, %v3484_v1  ;;  %v3672_v27 = vadd.f32 %v3668_v24, %v3483_v0 }
0x1247   :  { %v3684_v28 = vsel %vm3683_vm7, %v3672_v27, 0.0  ;;  %v3680_v29 = vrot.slane %v3673_v26, 7 }
0x1248   :  { %3685 = vadd.xlane.f32.xlu0 %v3684_v28 }
0x1249   :  { %v3688_v30 = vsel %vm3687_vm8, %v3680_v29, 0.0 }
0x124a   :  { %3689 = vadd.xlane.f32.xlu1 %v3688_v30 }
0x12d1   :  { %v3686_v31 = vpop.xlane.xlu0 %3685 }
0x12d2   :  { %v3691_v32 = vmul.f32 0.03125, %v3686_v31 }
0x12d3   :  { %v3690_v33 = vpop.xlane.xlu1 %3689 }
0x12d4   :  { %v3698_v34 = vsub.f32 %v3672_v27, %v3691_v32  ;;  %v3692_v35 = vmul.f32 0.03125, %v3690_v33 }
0x12d6   :  { %v3695_v4 = vrot.slane %v3692_v35, 1  ;;  %v3700_v10 = vmul.f32 %v3698_v34, %v3698_v34 }
0x12d8   :  { %v3699_v36 = vsub.f32 %v3673_v26, %v3695_v4  ;;  %v3707_v37 = vsel %vm3683_vm7, %v3700_v10, 0.0 }
0x12d9   :  { %3708 = vadd.xlane.f32.xlu0 %v3707_v37 }
0x12da   :  { %v3701_v38 = vmul.f32 %v3699_v36, %v3699_v36 }
0x12dc   :  { %v3704_v39 = vrot.slane %v3701_v38, 7 }
0x12de   :  { %v3710_v40 = vsel %vm3687_vm8, %v3704_v39, 0.0 }
0x12df   :  { %3711 = vadd.xlane.f32.xlu1 %v3710_v40 }
0x1362   :  { %v3709_v58 = vpop.xlane.xlu0 %3708 }
0x1363   :  { %v3713_v42 = vmul.f32 0.03125, %v3709_v58 }
0x1365   :  { %v3715_v43 = vadd.f32 1e-05, %v3713_v42 }
0x1367   :  { %4443 = vrsqrt.f32 %v3715_v43 }
0x1368   :  { %v3712_v44 = vpop.xlane.xlu1 %3711 }
0x1369   :  { %v3714_v45 = vmul.f32 0.03125, %v3712_v44 }
0x136b   :  { %v3716_v46 = vadd.f32 1e-05, %v3714_v45 }
0x136d   :  { %4445 = vrsqrt.f32 %v3716_v46 }
0x1374   :  { %v4444_v47 = vpop.eup %4443 }
0x1375   :  { %v3724_v48 = vmul.f32 %v4444_v47, %v3698_v34 }
0x1377   :  { %v3732_v50 = vmul.f32 %v3951_v49, %v3724_v48 }
0x1379   :  { %v3740_v53 = vadd.f32 %v3952_v7, %v3732_v50 }
0x137a   :  { %v4446_v5 = vpop.eup %4445 }
0x137b   :  { %v3721_v2 = vrot.slane %v4446_v5, 1  ;;  %v3755_v55 = vrot.slane %v3740_v53, 7 }
0x137d   :  { %v3725_v51 = vmul.f32 %v3721_v2, %v3699_v36 }
0x137f   :  { %v3733_v52 = vmul.f32 %v3951_v49, %v3725_v51 }
0x1381   :  { %v3741_v54 = vadd.f32 %v3952_v7, %v3733_v52 }
0x1383   :  { %v3756_v56 = vrot.slane %v3741_v54, 6 }
0x1385   :  { %v3757_v57 = vsel %vm3502_vm6, %v3756_v56, %v3755_v55 }
0x1386   :  { %4351 = vmatmul.mubr.msk.f32.vlgmr.msra.gmra.mxu1 %vm92_vm0, %v3757_v57 }
0x1446   :  { %v3826_v61 = vpop.f32.mrf.mxu1 }
0x1447   :  { %v3827_v62 = vadd.f32 %v3953_v60, %v3826_v61 }
0x1448   :  { %v4352_v63 = vpop.f32.mrf.mxu1 }
0x1449   :  { %3830 = vst [vmem:[#allocation7] sm:$0x3] %v3827_v62 }
0x144a   :  { %4498 = shalt.err (!%p4495_p0)
}
0x144b   :  { %3840 = dma.vmem_to_hbm [thread:$0]  %s3838_s2, 32, %s5243_s15, [#allocation4]  }
0x144c   :  { %4511 = dma.done.wait [#allocation4], 32  }
0x144d   :  { %4512 = vsyncadd [#allocation4], 4294967264 }
0x144e   :  { %3844 = vsyncpa [#allocation3], 1 }
0x144f   :  { %3845 = vsyncpa [#allocation6], 1 }
0x1450   :  { %3846 = vsyncpa [#allocation4], 1 }

</bundles_post_ra>
